<compile_context>
chip_gen: v6e
topology: v6e:2x2x1
jax: 0.10.0
libtpu: 0.0.40
codegen_flags: <defaults>
</compile_context>

<pallas_src>
import jax
import jax.numpy as jnp
from jax import lax
from jax.experimental import pallas as pl
from jax.experimental.pallas import tpu as pltpu


def gah_triples_kernel(intm_ref, atop_ref, emb_ref, c_ref, alpha_ref):
    """One batch block.

    intm_ref  : (tb, 2, E)      conj(ComplexLinear(x)) as [real; imag]
    atop_ref  : (tb, G)         alpha_graph_attention_top (squeezed)
    emb_ref   : (tb, 2, GT, E)  packed [real; imag] all_embeddings, GT = G*T
    c_ref     : (tb, E)         out: c_hierarchical
    alpha_ref : (tb, G, T)      out: alpha
    """
    f32 = jnp.float32
    tb, G, T = alpha_ref.shape
    GT = G * T

    intm = intm_ref[...]                      # (tb, 2, E)
    emb = emb_ref[...]                        # (tb, 2, GT, E)  one load
    er = emb[:, 0]                            # (tb, GT, E)  real part
    ei = emb[:, 1]                            # (tb, GT, E)  imag part

    # beta = | sum_e all_embeddings * intermediate |  -> (tb, G, T), on the MXU
    dn_e = (((2,), (2,)), ((0,), (0,)))       # contract E, batch over b
    pr = lax.dot_general(intm, er, dn_e, preferred_element_type=f32)  # (tb,2,GT)
    pi = lax.dot_general(intm, ei, dn_e, preferred_element_type=f32)  # (tb,2,GT)
    beta_r = pr[:, 0, :] - pi[:, 1, :]
    beta_i = pr[:, 1, :] + pi[:, 0, :]
    beta = jnp.sqrt(beta_r * beta_r + beta_i * beta_i).reshape(tb, G, T)

    # softmax over triples (dim=2), weighted by the top-level subgraph attention
    bmax = jnp.max(beta, axis=2, keepdims=True)
    e = jnp.exp(beta - bmax)
    sm = e / jnp.sum(e, axis=2, keepdims=True)
    alpha = atop_ref[...][:, :, None] * sm    # (tb, G, T) f32
    alpha_ref[...] = alpha

    # c_hierarchical = | sum_{g,t} alpha * all_embeddings | -> (tb, E), on the MXU
    a3 = alpha.reshape(tb, GT)[:, None, :].astype(er.dtype)   # (tb, 1, GT)
    dn_gt = (((2,), (1,)), ((0,), (0,)))      # contract G*T, batch over b
    c_r = lax.dot_general(a3, er, dn_gt, preferred_element_type=f32)[:, 0, :]
    c_i = lax.dot_general(a3, ei, dn_gt, preferred_element_type=f32)[:, 0, :]
    c_ref[...] = jnp.sqrt(c_r * c_r + c_i * c_i)


def _vmem_capacity_bytes():
    try:
        return int(pltpu.get_tpu_info().vmem_capacity_bytes)
    except Exception:
        return 64 << 20        # conservative (v7x-sized) fallback


def graph_attention_hierarchy_triples(decoder_hidden_state,
                                      alpha_graph_attention_top,
                                      all_embeddings_r, all_embeddings_i,
                                      sentence_ids,
                                      w_r, w_i, b_r, b_i,
                                      *, block_b=None):
    B, H = decoder_hidden_state.shape
    _, G, T, E = all_embeddings_r.shape
    GT = G * T

    # ---- hoisted ComplexLinear: intermediate = conj((W_r + i W_i) x + b) ----
    # decoder hidden state has zero imaginary part:
    #   real = x W_r + b_r,  imag = -(x W_i + b_i)
    x = decoder_hidden_state.astype(jnp.float32)
    w_cat = jnp.concatenate([w_r, w_i], axis=1).astype(jnp.float32)      # (H, 2E)
    b_cat = jnp.concatenate([b_r, b_i], axis=0).astype(jnp.float32)      # (2E,)
    xw = jnp.dot(x, w_cat, precision=lax.Precision.HIGHEST) + b_cat      # (B, 2E)
    intm = jnp.stack([xw[:, :E], -xw[:, E:]], axis=1)                    # (B, 2, E)

    # ---- pack embeddings into one stream: (B, 2, GT, E) ---------------------
    stream_dtype = (jnp.bfloat16 if all_embeddings_r.dtype == jnp.bfloat16
                    else jnp.float32)
    emb_packed = jnp.stack(
        [all_embeddings_r.reshape(B, GT, E), all_embeddings_i.reshape(B, GT, E)],
        axis=1).astype(stream_dtype)                                     # (B,2,GT,E)
    intm = intm.astype(stream_dtype)
    atop2d = alpha_graph_attention_top.reshape(B, G).astype(jnp.float32)

    # ---- generation-aware batch block + VMEM budget --------------------------
    itemsize = 2 if stream_dtype == jnp.bfloat16 else 4
    row_bytes = (itemsize * (2 * GT * E + 2 * E)      # emb block + intermediate
                 + 4 * (G + E + GT))                  # atop + c out + alpha out
    vmem_cap = _vmem_capacity_bytes()
    if vmem_cap >= (100 << 20):          # v5e / v6e : 128 MiB physical VMEM
        target_step_bytes = 24 << 20
        vmem_cap_limit = 96 << 20
    else:                                # v7x : 64 MiB physical VMEM
        target_step_bytes = 12 << 20
        vmem_cap_limit = 48 << 20

    if block_b is None:
        if B <= 8:
            tb = B
        else:
            tb = max(8, (target_step_bytes // max(row_bytes, 1)) // 8 * 8)
            # keep the grid at >= 2 steps: lets the "parallel" batch axis split
            # across both v7x TensorCores and gives the pipeline overlap room.
            half_up = ((B // 2 + 7) // 8) * 8
            tb = min(tb, max(8, half_up), B)
    else:
        tb = block_b
        assert tb == B or (tb % 8 == 0 and tb <= B), \
            "block_b must be B or a multiple of 8"
    grid = (pl.cdiv(B, tb),)   # partial last block is fine: batch is not a tiled dim

    step_bytes = tb * row_bytes
    vmem_limit = int(min(max(3 * step_bytes + (4 << 20), 16 << 20), vmem_cap_limit))

    in_specs = [
        pl.BlockSpec((tb, 2, E), lambda i: (i, 0, 0)),
        pl.BlockSpec((tb, G), lambda i: (i, 0)),
        pl.BlockSpec((tb, 2, GT, E), lambda i: (i, 0, 0, 0)),
    ]
    out_specs = (
        pl.BlockSpec((tb, E), lambda i: (i, 0)),
        pl.BlockSpec((tb, G, T), lambda i: (i, 0, 0)),
    )
    out_shapes = (
        jax.ShapeDtypeStruct((B, E), jnp.float32),
        jax.ShapeDtypeStruct((B, G, T), jnp.float32),
    )

    c, alpha = pl.pallas_call(
        gah_triples_kernel,
        out_shape=out_shapes,
        grid=grid,
        in_specs=in_specs,
        out_specs=out_specs,
        compiler_params=pltpu.CompilerParams(
            dimension_semantics=("parallel",),
            vmem_limit_bytes=vmem_limit,
        ),
    )(intm, atop2d, emb_packed)

    # ---- tiny XLA epilogue on the (B, G, T) alpha ----------------------------
    # predicted_subgraph_token_index = argmax_g max_t alpha
    psub = jnp.argmax(jnp.max(alpha, axis=2), axis=1).astype(jnp.int32)
    # predicted_triple_index_in_subgraph = argmax_t alpha[sentence_ids, psub, :]
    # (cross-batch gather: sentence_ids may point at any batch row, so it stays
    #  outside the batch-blocked kernel)
    sel = alpha[sentence_ids.astype(jnp.int32), psub]                    # (B, T)
    ptri = jnp.argmax(sel, axis=1).astype(jnp.int32)
    return c, psub, ptri


def reference(x, alpha_top, emb_r, emb_i, sid, wr, wi, br, bi):
    """Pure-JAX reference mirroring the PyTorch forward (complex dtype)."""
    hi = lax.Precision.HIGHEST
    int_r = jnp.dot(x, wr, precision=hi) + br
    int_i = -(jnp.dot(x, wi, precision=hi) + bi)     # conj of ComplexLinear output
    interm = int_r + 1j * int_i
    emb = emb_r + 1j * emb_i
    beta = jnp.abs(jnp.sum(emb * interm[:, None, None, :], axis=3))
    alpha = alpha_top * jax.nn.softmax(beta, axis=2)
    c = jnp.abs(jnp.sum(jnp.sum(alpha[..., None] * emb, axis=2), axis=1))
    psub = jnp.argmax(jnp.max(alpha, axis=2), axis=1)
    sel = alpha[sid, psub, :]
    ptri = jnp.argmax(sel, axis=1)
    return c, psub.astype(jnp.int32), ptri.astype(jnp.int32), alpha


if __name__ == "__main__":
    # small shapes: batch=16 (auto-picked 2 grid blocks of 8), hidden=64,
    # embed=64, subgraphs=4, triples-per-subgraph=8
    B, H, E, G, T = 16, 64, 64, 4, 8
    key = jax.random.PRNGKey(0)
    ks = jax.random.split(key, 8)

    x = jax.random.normal(ks[0], (B, H), jnp.float32)
    alpha_top = jax.nn.softmax(jax.random.normal(ks[1], (B, G, 1), jnp.float32), axis=1)
    emb_r = jax.random.normal(ks[2], (B, G, T, E), jnp.float32)
    emb_i = jax.random.normal(ks[3], (B, G, T, E), jnp.float32)
    sentence_ids = jnp.arange(B, dtype=jnp.int32)

    # deterministic ComplexLinear params (uniform(-1/sqrt(H), 1/sqrt(H)))
    scale = 1.0 / float(H) ** 0.5
    w_r = jax.random.uniform(ks[4], (H, E), jnp.float32, -scale, scale)
    w_i = jax.random.uniform(ks[5], (H, E), jnp.float32, -scale, scale)
    b_r = jax.random.uniform(ks[6], (E,), jnp.float32, -scale, scale)
    b_i = jax.random.uniform(ks[7], (E,), jnp.float32, -scale, scale)

    c, psub, ptri = graph_attention_hierarchy_triples(
        x, alpha_top, emb_r, emb_i, sentence_ids, w_r, w_i, b_r, b_i)
    jax.block_until_ready((c, psub, ptri))

    c_ref, psub_ref, ptri_ref, alpha_ref = reference(
        x, alpha_top, emb_r, emb_i, sentence_ids, w_r, w_i, b_r, b_i)

    # c: tolerant check -- the in-kernel emb matmuls intentionally run at the
    # default (non-HIGHEST) MXU precision per the performance review.
    assert jnp.allclose(c, c_ref, rtol=8e-2, atol=8e-2), \
        float(jnp.max(jnp.abs(c - c_ref)))

    bidx = jnp.arange(B)
    # psub: exact match or a numerical near-tie in the reference alpha
    top_g = jnp.max(alpha_ref, axis=2)                               # (B, G)
    assert bool(jnp.all(top_g[bidx, psub] >= jnp.max(top_g, axis=1) - 5e-2))
    # ptri: must (near-)maximise the reference alpha row the kernel selected
    row = alpha_ref[sentence_ids, psub]                              # (B, T)
    assert bool(jnp.all(row[bidx, ptri] >= jnp.max(row, axis=1) - 5e-2))

    assert c.shape == (B, E) and psub.shape == (B,) and ptri.shape == (B,)
    print("KERNEL_OK")
</pallas_src>

<mosaic_0001>
module attributes {stable_mosaic.version = 11 : i64} {
  func.func @gah_triples_kernel(%arg0: i32, %arg1: memref<8x2x64xf32, #tpu.memory_space<vmem>>, %arg2: memref<8x4xf32, #tpu.memory_space<vmem>>, %arg3: memref<8x2x32x64xf32, #tpu.memory_space<vmem>>, %arg4: memref<8x64xf32, #tpu.memory_space<vmem>>, %arg5: memref<8x4x8xf32, #tpu.memory_space<vmem>>) attributes {dimension_semantics = [#tpu.dimension_semantics<parallel>], iteration_bounds = array<i64: 2>, scalar_prefetch = 0 : i64, scratch_operands = 0 : i64, tpu.core_type = #tpu.core_type<tc>, window_params = [{transform_indices = @transform_0, window_bounds = array<i64: 8, 2, 64>}, {transform_indices = @transform_1, window_bounds = array<i64: 8, 4>}, {transform_indices = @transform_2, window_bounds = array<i64: 8, 2, 32, 64>}, {transform_indices = @transform_3, window_bounds = array<i64: 8, 64>}, {transform_indices = @transform_4, window_bounds = array<i64: 8, 4, 8>}]} {
    %c0 = arith.constant 0 : index
    %c0_0 = arith.constant 0 : index
    %c0_1 = arith.constant 0 : index
    %0 = vector.load %arg1[%c0, %c0_0, %c0_1] : memref<8x2x64xf32, #tpu.memory_space<vmem>>, vector<8x2x64xf32>
    %c0_2 = arith.constant 0 : index
    %c0_3 = arith.constant 0 : index
    %c0_4 = arith.constant 0 : index
    %c0_5 = arith.constant 0 : index
    %1 = vector.load %arg3[%c0_2, %c0_3, %c0_4, %c0_5] : memref<8x2x32x64xf32, #tpu.memory_space<vmem>>, vector<8x2x32x64xf32>
    %2 = vector.extract_strided_slice %1 {offsets = [0, 0, 0, 0], sizes = [8, 1, 32, 64], strides = [1, 1, 1, 1]} : vector<8x2x32x64xf32> to vector<8x1x32x64xf32>
    %3 = vector.shape_cast %2 : vector<8x1x32x64xf32> to vector<8x32x64xf32>
    %4 = vector.extract_strided_slice %1 {offsets = [0, 1, 0, 0], sizes = [8, 1, 32, 64], strides = [1, 1, 1, 1]} : vector<8x2x32x64xf32> to vector<8x1x32x64xf32>
    %5 = vector.shape_cast %4 : vector<8x1x32x64xf32> to vector<8x32x64xf32>
    %cst = arith.constant dense<0.000000e+00> : vector<8x2x32xf32>
    %6 = tpu.matmul %0, %3, %cst {dimension_numbers = #tpu.dot_dimension_numbers<[2], [2], [1], [1], [0, 0, 0, 1, 1, 1], [0], [0]>} : vector<8x2x64xf32>, vector<8x32x64xf32>, vector<8x2x32xf32> -> vector<8x2x32xf32>
    %cst_6 = arith.constant dense<0.000000e+00> : vector<8x2x32xf32>
    %7 = tpu.matmul %0, %5, %cst_6 {dimension_numbers = #tpu.dot_dimension_numbers<[2], [2], [1], [1], [0, 0, 0, 1, 1, 1], [0], [0]>} : vector<8x2x64xf32>, vector<8x32x64xf32>, vector<8x2x32xf32> -> vector<8x2x32xf32>
    %8 = vector.extract_strided_slice %6 {offsets = [0, 0, 0], sizes = [8, 1, 32], strides = [1, 1, 1]} : vector<8x2x32xf32> to vector<8x1x32xf32>
    %9 = vector.shape_cast %8 : vector<8x1x32xf32> to vector<8x32xf32>
    %10 = vector.extract_strided_slice %7 {offsets = [0, 1, 0], sizes = [8, 1, 32], strides = [1, 1, 1]} : vector<8x2x32xf32> to vector<8x1x32xf32>
    %11 = vector.shape_cast %10 : vector<8x1x32xf32> to vector<8x32xf32>
    %12 = arith.subf %9, %11 : vector<8x32xf32>
    %13 = vector.extract_strided_slice %6 {offsets = [0, 1, 0], sizes = [8, 1, 32], strides = [1, 1, 1]} : vector<8x2x32xf32> to vector<8x1x32xf32>
    %14 = vector.shape_cast %13 : vector<8x1x32xf32> to vector<8x32xf32>
    %15 = vector.extract_strided_slice %7 {offsets = [0, 0, 0], sizes = [8, 1, 32], strides = [1, 1, 1]} : vector<8x2x32xf32> to vector<8x1x32xf32>
    %16 = vector.shape_cast %15 : vector<8x1x32xf32> to vector<8x32xf32>
    %17 = arith.addf %14, %16 : vector<8x32xf32>
    %18 = arith.mulf %12, %12 : vector<8x32xf32>
    %19 = arith.mulf %17, %17 : vector<8x32xf32>
    %20 = arith.addf %18, %19 : vector<8x32xf32>
    %21 = math.sqrt %20 : vector<8x32xf32>
    %22 = vector.shape_cast %21 : vector<8x32xf32> to vector<8x4x8xf32>
    %cst_7 = arith.constant dense<0xFF800000> : vector<8x4xf32>
    %23 = vector.multi_reduction <maximumf>, %22, %cst_7 [2] : vector<8x4x8xf32> to vector<8x4xf32>
    %24 = vector.shape_cast %23 : vector<8x4xf32> to vector<8x4x1xf32>
    %25 = vector.broadcast %24 : vector<8x4x1xf32> to vector<8x4x8xf32>
    %26 = arith.subf %22, %25 : vector<8x4x8xf32>
    %27 = math.exp %26 : vector<8x4x8xf32>
    %cst_8 = arith.constant dense<0.000000e+00> : vector<8x4xf32>
    %28 = vector.multi_reduction <add>, %27, %cst_8 [2] : vector<8x4x8xf32> to vector<8x4xf32>
    %29 = vector.shape_cast %28 : vector<8x4xf32> to vector<8x4x1xf32>
    %30 = vector.broadcast %29 : vector<8x4x1xf32> to vector<8x4x8xf32>
    %31 = arith.divf %27, %30 : vector<8x4x8xf32>
    %c0_9 = arith.constant 0 : index
    %c0_10 = arith.constant 0 : index
    %32 = vector.load %arg2[%c0_9, %c0_10] : memref<8x4xf32, #tpu.memory_space<vmem>>, vector<8x4xf32>
    %33 = vector.shape_cast %32 : vector<8x4xf32> to vector<8x4x1xf32>
    %34 = vector.broadcast %33 : vector<8x4x1xf32> to vector<8x4x8xf32>
    %35 = arith.mulf %34, %31 : vector<8x4x8xf32>
    %c0_11 = arith.constant 0 : index
    %c0_12 = arith.constant 0 : index
    %c0_13 = arith.constant 0 : index
    %36 = vector.load %arg5[%c0_11, %c0_12, %c0_13] : memref<8x4x8xf32, #tpu.memory_space<vmem>>, vector<8x4x8xf32>
    tpu.vector_store %arg5[%c0_11, %c0_12, %c0_13], %35 {strides = array<i32>} : memref<8x4x8xf32, #tpu.memory_space<vmem>>, vector<8x4x8xf32>,
    %37 = vector.shape_cast %35 : vector<8x4x8xf32> to vector<8x32xf32>
    %38 = vector.shape_cast %37 : vector<8x32xf32> to vector<8x1x32xf32>
    %cst_14 = arith.constant dense<0.000000e+00> : vector<8x1x64xf32>
    %39 = tpu.matmul %38, %3, %cst_14 {dimension_numbers = #tpu.dot_dimension_numbers<[2], [1], [1], [2], [0, 0, 0, 1, 1, 2], [0], [0]>} : vector<8x1x32xf32>, vector<8x32x64xf32>, vector<8x1x64xf32> -> vector<8x1x64xf32>
    %40 = vector.shape_cast %39 : vector<8x1x64xf32> to vector<8x64xf32>
    %cst_15 = arith.constant dense<0.000000e+00> : vector<8x1x64xf32>
    %41 = tpu.matmul %38, %5, %cst_15 {dimension_numbers = #tpu.dot_dimension_numbers<[2], [1], [1], [2], [0, 0, 0, 1, 1, 2], [0], [0]>} : vector<8x1x32xf32>, vector<8x32x64xf32>, vector<8x1x64xf32> -> vector<8x1x64xf32>
    %42 = vector.shape_cast %41 : vector<8x1x64xf32> to vector<8x64xf32>
    %43 = arith.mulf %40, %40 : vector<8x64xf32>
    %44 = arith.mulf %42, %42 : vector<8x64xf32>
    %45 = arith.addf %43, %44 : vector<8x64xf32>
    %46 = math.sqrt %45 : vector<8x64xf32>
    %c0_16 = arith.constant 0 : index
    %c0_17 = arith.constant 0 : index
    %47 = vector.load %arg4[%c0_16, %c0_17] : memref<8x64xf32, #tpu.memory_space<vmem>>, vector<8x64xf32>
    tpu.vector_store %arg4[%c0_16, %c0_17], %46 {strides = array<i32>} : memref<8x64xf32, #tpu.memory_space<vmem>>, vector<8x64xf32>,
    return
  }
  func.func @transform_0(%arg0: i32) -> (i32, i32, i32) {
    %c0_i32 = arith.constant 0 : i32
    %c0_i32_0 = arith.constant 0 : i32
    %c0_i32_1 = arith.constant 0 : i32
    return %arg0, %c0_i32, %c0_i32_0 : i32, i32, i32
  }
  func.func @transform_1(%arg0: i32) -> (i32, i32) {
    %c0_i32 = arith.constant 0 : i32
    %c0_i32_0 = arith.constant 0 : i32
    return %arg0, %c0_i32 : i32, i32
  }
  func.func @transform_2(%arg0: i32) -> (i32, i32, i32, i32) {
    %c0_i32 = arith.constant 0 : i32
    %c0_i32_0 = arith.constant 0 : i32
    %c0_i32_1 = arith.constant 0 : i32
    %c0_i32_2 = arith.constant 0 : i32
    return %arg0, %c0_i32, %c0_i32_0, %c0_i32_1 : i32, i32, i32, i32
  }
  func.func @transform_3(%arg0: i32) -> (i32, i32) {
    %c0_i32 = arith.constant 0 : i32
    %c0_i32_0 = arith.constant 0 : i32
    return %arg0, %c0_i32 : i32, i32
  }
  func.func @transform_4(%arg0: i32) -> (i32, i32, i32) {
    %c0_i32 = arith.constant 0 : i32
    %c0_i32_0 = arith.constant 0 : i32
    %c0_i32_1 = arith.constant 0 : i32
    return %arg0, %c0_i32, %c0_i32_0 : i32, i32, i32
  }
}

</mosaic_0001>

<bundles_post_ra>
// kernel: tpu_custom_call.1
= control target key start
LH: loop header
LB: loop body
LE: loop exit
PB: predicated region body
PF: predicated region fallthrough
CT: control target
= control target key end

     0   :  { %10 = vsyncpa [#allocation3], 0  ;;  %s6004_s0 = inlined_call_operand.hbm [shape: f32[16,2,64], index: 0, kind: input, shape index: {}]   ;;  %s6005_s1 = inlined_call_operand.vmem [shape: f32[16,4], index: 1, kind: input, shape index: {}]   ;;  %s6006_s2 = inlined_call_operand.hbm [shape: f32[16,2,32,64], index: 2, kind: input, shape index: {}]   ;;  %s6007_s3 = inlined_call_operand.hbm [shape: f32[16,64], index: 3, kind: output, shape index: {0}]   ;;  %s6008_s4 = inlined_call_operand.vmem [shape: f32[16,4,8], index: 4, kind: output, shape index: {1}]  }
   0x1   :  { %12 = vsyncpa [#allocation3 + $0x1], 0 }
   0x2   :  { %13 = vsyncpa [#allocation6], 0 }
   0x3   :  { %15 = vsyncpa [#allocation6 + $0x1], 0 }
   0x4   :  { %16 = vsyncpa [#allocation4], 0 }
   0x5   :  { %18 = vsyncpa [#allocation4 + $0x1], 0  ;;  %s4914_s15 = smov 0   ;;  %s4916_s16 = smov 0  }
   0x6   :  { %s4918_s17 = smov 0   ;;  %s4920_s18 = smov 0  }
   0x7 LB: > { %s4935_s19 = sadd.s32 4294967295, %s4870_s18   ;;  %s3929_s20 = sadd.s32 4294967294, %s4870_s18   ;;  %s4870_s18 = sphi %s4920_s18, %s6024_s18   ;;  %s4866_s17 = sphi %s4918_s17, %s6023_s17   ;;  %s4862_s16 = sphi %s4916_s16, %s6022_s16   ;;  %s4858_s15 = sphi %s4914_s15, %s6021_s15  }
   0x8   : > { %s4939_s21 = sadd.s32 1, %s4870_s18   ;;  %s31_s22 = sadd.s32 1, %s4866_s17 }
   0x9   : > { %s28_s23 = ssub.s32 %s4870_s18, %s4939_s21  ;;  %p38_p0 = scmp.ne.s32.totalorder %s4866_s17, %s4862_s16 }
   0xa   : > { %p29_p1 = scmp.eq.s32.totalorder %s28_s23, 0  ;;  %p39_p2 = scmp.eq.s32.totalorder %s4870_s18, 0 }
   0xb   : > { %p44_p3 = scmp.ne.s32.totalorder %s4862_s16, %s4858_s15  ;;  %p45_p4 = scmp.eq.s32.totalorder %s4935_s19, 0 }
   0xc   : > { %s4951_s24 = scalar_select %p29_p1, %s4866_s17, %s31_s22  }
   0xd   : > { %p4953_p5 = por %p39_p2, %p38_p0  ;;  %p4957_p6 = por %p45_p4, %p44_p3 }
   0xe   : > { %p120_p7 = scmp.eq.s32.totalorder %s4935_s19, 1  ;;  %p126_p8 = scmp.eq.s32.totalorder %s3929_s20, 1 }
   0xf   : > { %s6012_s26 = scalar_select %p4957_p6, 1, 0 }
  0x10   : > { %p4578_p10 = scmp.lt.s32.totalorder %s4870_s18, 2  ;;  %p4964_p11 = por %p120_p7, %p38_p0 }
  0x11   : > { %p4968_p12 = por %p126_p8, %p44_p3  ;;  %s4973_s29 = sand.u32 1, %s4866_s17  }
  0x12   : > { %s6013_s27 = scalar_select %p4964_p11, 1, 0 }
  0x13   : > { %s6014_s28 = scalar_select %p4968_p12, 1, 0 }
  0x14   : > { %s4046_s30 = sshll.u32 %s4870_s18, 8  ;;  %s3932_s5 = sshll.u32 %s4973_s29, 4 }
  0x15   : > { %s4980_s8 = scalar_lea.hbm %s6004_s0, %s4046_s30  ;;  %s176_s9 = scalar_lea.vmem [#allocation2], %s3932_s5 }
  0x16   : > { %s183_s10 = sshll.u32 %s176_s9, 4  ;;  %p4984_p13 = pnand %p4578_p10, %p4953_p5  ;;  %s4988_s10 = int_to_ptr.vmem [resolvable:$true] %s183_s10 }
  0x17   : > { %s173_s12 = scalar_lea.sflag [#allocation3], %s4973_s29  ;;  %s4746_s13 = scalar_lea.hbm %s4980_s8, 256 }
  0x18   : > { %p4747_p0 = scmp.ne.s32.totalorder %s4980_s8, %s4746_s13  ;;  %p4748_p1 = pneg %p4984_p13 }
  0x19   : > { %s4751_s22 = scalar_lea.hbm %s6004_s0, 512  ;;  %p4752_p4 = scmp.lt.s32.totalorder %s4980_s8, %s6004_s0 }
  0x1a   : > { %p4749_p2 = pnand %p4748_p1, %p4747_p0  ;;  %p4753_p5 = scmp.lt.s32.totalorder %s4751_s22, %s4746_s13 }
  0x1c   : > { %p4750_p3 = pneg %p4749_p2  ;;  %p4754_p7 = por %p4753_p5, %p4752_p4 }
  0x1e   : > { %p4755_p8 = pnand %p4754_p7, %p4750_p3 }
  0x20   : > { %4758 = shalt.err (!%p4755_p8)
}
  0x21   : > { %s4759_s30 = scalar_lea.vmem %s4988_s10, 256  ;;  %s4872_s5 = smov [#allocation2]  }
  0x22   : > { %p4760_p10 = scmp.ne.s32.totalorder %s4988_s10, %s4759_s30  ;;  %s4764_s6 = sshll.u32 %s4872_s5, 4  ;;  %s4765_s6 = int_to_ptr.vmem [resolvable:$false] %s4764_s6 }
  0x23   : > { %s4766_s7 = scalar_lea.vmem %s4765_s6, 512  ;;  %p4767_p9 = scmp.lt.s32.totalorder %s4988_s10, %s4765_s6 }
  0x24   : > { %p4762_p0 = pnand %p4760_p10, %p4748_p1  ;;  %p4768_p12 = scmp.lt.s32.totalorder %s4766_s7, %s4759_s30 }
  0x26   : > { %p4763_p2 = pneg %p4762_p0  ;;  %p4769_p11 = por %p4768_p12, %p4767_p9 }
  0x28   : > { %p4770_p4 = pnand %p4769_p11, %p4763_p2 }
  0x2a   : > { %4773 = shalt.err (!%p4770_p4)
}
  0x2b   : > { %s4873_s9 = smov 32   ;;  %s4874_s13 = smov 2  }
  0x2c   : > { %4570 = dma.hbm_to_vmem [thread:$0]  (!%p4984_p13), %s4980_s8, 256, %s4988_s10, %s173_s12, %s4873_s9, %s4873_s9, %s4874_s13  }
  0x2d   : > { %p3939_p3 = scmp.ge.s32.totalorder %s4870_s18, 1  ;;  %p220_p5 = scmp.lt.s32.totalorder %s4870_s18, 3 }
  0x2e   : > { %s3935_s14 = sshll.u32 %s4973_s29, 9  ;;  %s4048_s22 = sshll.u32 %s4870_s18, 13 }
  0x2f   : > { %p5020_p9 = pnand %p3939_p3, %p220_p5  ;;  %s204_s23 = scalar_lea.vmem [#allocation5], %s3935_s14 }
  0x30   : > { %s212_s25 = sshll.u32 %s204_s23, 4  ;;  %s5028_s6 = scalar_lea.hbm %s6006_s2, %s4048_s22  ;;  %s5030_s25 = int_to_ptr.vmem [resolvable:$true] %s212_s25 }
  0x31   : > { %s201_s8 = scalar_lea.sflag [#allocation6], %s4973_s29  ;;  %s4774_s10 = scalar_lea.hbm %s5028_s6, 8192 }
  0x32   : > { %p4775_p11 = scmp.ne.s32.totalorder %s5028_s6, %s4774_s10  ;;  %s4779_s9 = scalar_lea.hbm %s6006_s2, 16384 }
  0x33   : > { %p4780_p8 = scmp.lt.s32.totalorder %s5028_s6, %s6006_s2  ;;  %p4781_p10 = scmp.lt.s32.totalorder %s4779_s9, %s4774_s10 }
  0x34   : > { %p4777_p12 = pnand %p4775_p11, %p4748_p1 }
  0x35   : > { %p4782_p0 = por %p4781_p10, %p4780_p8 }
  0x36   : > { %p4778_p7 = pneg %p4777_p12 }
  0x38   : > { %p4783_p2 = pnand %p4782_p0, %p4778_p7 }
  0x3a   : > { %4786 = shalt.err (!%p4783_p2)
}
  0x3b   : > { %s4787_s22 = scalar_lea.vmem %s5030_s25, 8192  ;;  %s4875_s23 = smov [#allocation5]  }
  0x3c   : > { %p4788_p4 = scmp.ne.s32.totalorder %s5030_s25, %s4787_s22  ;;  %s4792_s30 = sshll.u32 %s4875_s23, 4  ;;  %s4793_s30 = int_to_ptr.vmem [resolvable:$false] %s4792_s30 }
  0x3d   : > { %s4794_s5 = scalar_lea.vmem %s4793_s30, 16384  ;;  %p4795_p11 = scmp.lt.s32.totalorder %s5030_s25, %s4793_s30 }
  0x3e   : > { %p4790_p3 = pnand %p4788_p4, %p4748_p1  ;;  %p4796_p12 = scmp.lt.s32.totalorder %s4794_s5, %s4787_s22 }
  0x40   : > { %p4791_p5 = pneg %p4790_p3  ;;  %p4797_p6 = por %p4796_p12, %p4795_p11 }
  0x42   : > { %p4798_p8 = pnand %p4797_p6, %p4791_p5 }
  0x44   : > { %4801 = shalt.err (!%p4798_p8)
}
  0x45   : > { %s4876_s10 = smov 128   ;;  %s4877_s12 = smov 8  }
  0x46   : > { %4573 = dma.hbm_to_vmem [thread:$0]  (!%p4984_p13), %s5028_s6, 8192, %s5030_s25, %s201_s8, %s4876_s10, %s4876_s10, %s4877_s12  }
  0x47   : > { %224 = sbr.rel (%p5020_p9) target bundleno = 1359 (0x54f), region = 32  ;;  %s5060_s7 = sand.u32 (!%p5020_p9), 1, %s4862_s16  }
  0x48   : > { %s3940_s9 = sshll.u32 (!%p5020_p9), %s5060_s7, 4  ;;  %s227_s13 = scalar_lea.sflag (!%p5020_p9), [#allocation3], %s5060_s7 }
  0x49   : > { %s5064_s14 = scalar_lea.vmem (!%p5020_p9), [#allocation2], %s3940_s9  ;;  %p6017_p6 = scmp.ne.s32.totalorder (!%p5020_p9), %s6012_s26, 0 }
  0x4c   : > { %4845 = dma.done.wait (%p6017_p6), %s227_s13, 256  }
  0x4d   : > { %4847 = vsyncadd (%p6017_p6), %s227_s13, 4294967040  ;;  %s3941_s29 = sshll.u32 %s5060_s7, 9  ;;  %s236_s11 = scalar_lea.sflag [#allocation6], %s5060_s7 }
  0x4e   : > { %s5072_s20 = scalar_lea.vmem [#allocation5], %s3941_s29 }
  0x4f   : > { %4849 = dma.done.wait (%p6017_p6), %s236_s11, 8192  }
  0x50   : > { %4851 = vsyncadd (%p6017_p6), %s236_s11, 4294959104  ;;  %v4878_v0 = vmov 0.0   ;;  %vm4879_vm0 = vmmov 0   ;;  %vm362_vm1 = vcmask 523264   ;;  %v5085_v1 = vld [vmem:[%s5072_s20 + $0x18] sm:$0xff]  ;;  %v5097_v3 = vld [vmem:[%s5072_s20 + $0x10] sm:$0xff] }
  0x51   : > { %4209 = vmatprep.subr.mxu0 %v4878_v0  ;;  %4220 = vmatprep.subr.mxu1 %v4878_v0  ;;  %v5088_v2 = vld [vmem:[%s5072_s20 + $0x58] sm:$0xff]  ;;  %v5100_v4 = vld [vmem:[%s5072_s20 + $0x50] sm:$0xff]  ;;  %v5109_v5 = vld [vmem:[%s5072_s20 + $0x8] sm:$0xff]  ;;  %vm1916_vm3 = vcmask 1041409   ;;  %s4880_s26 = smov 104   ;;  %s4881_s25 = smov 120  }
  0x52   : > { %4217 = vmatprep.mubr.msk.f32.mxu0 %vm4879_vm0, %v4878_v0  ;;  %4228 = vmatprep.mubr.msk.f32.mxu1 %vm4879_vm0, %v4878_v0  ;;  %v5112_v6 = vld [vmem:[%s5072_s20 + $0x48] sm:$0xff]  ;;  %v5121_v7 = vld [vmem:[%s5072_s20] sm:$0xff]  ;;  %v317_v11 = vld [vmem:[%s5072_s20 + $0x98] sm:$0xff]  ;;  %s4882_s6 = smov 112   ;;  %vm1919_vm7 = vcmask 1042434   ;;  %vm1922_vm12 = vcmask 1043459  }
  0x53   : > { %4210 = vmatpush3.xpose.msk.msra.mxu0 %vm362_vm1, %v5085_v1  ;;  %4221 = vmatpush3.xpose.msk.msra.mxu1 %vm362_vm1, %v5088_v2  ;;  %v5124_v8 = vld [vmem:[%s5072_s20 + $0x40] sm:$0xff]  ;;  %v325_v12 = vld [vmem:[%s5072_s20 + $0xd8] sm:$0xff]  ;;  %v316_v13 = vld [vmem:[%s5072_s20 + $0x90] sm:$0xff]  ;;  %vm1925_vm13 = vcmask 1044484   ;;  %p279_p13 = scmp.lt.s32.totalorder %s4935_s19, 1  ;;  %s3944_s10 = sshll.u32 %s4935_s19, 3 }
  0x54   : > { %4211 = vmatprep.subr.mxu0 %v4878_v0  ;;  %4222 = vmatprep.subr.mxu1 %v4878_v0  ;;  %v5131_v9 = vld [vmem:[%s5064_s14] sm:$0x3]  ;;  %v5134_v10 = vld [vmem:[%s5064_s14 + $0x2] sm:$0x3]  ;;  %v315_v15 = vld [vmem:[%s5072_s20 + $0x88] sm:$0xff]  ;;  %p285_p1 = scmp.lt.s32.totalorder %s3944_s10, 15 }
  0x55   : > { %v324_v14 = vld [vmem:[%s5072_s20 + $0xd0] sm:$0xff]  ;;  %v323_v16 = vld [vmem:[%s5072_s20 + $0xc8] sm:$0xff]  ;;  %v314_v17 = vld [vmem:[%s5072_s20 + $0x80] sm:$0xff]  ;;  %s280_s8 = scalar_select %p279_p13, %s4935_s19, 1 }
  0x56   : > { %v322_v18 = vld [vmem:[%s5072_s20 + $0xc0] sm:$0xff]  ;;  %v333_v21 = vld [vmem:[%s5072_s20 + $0x118] sm:$0xff]  ;;  %v332_v23 = vld [vmem:[%s5072_s20 + $0x110] sm:$0xff]  ;;  %s6026_s10 = smov (!%p285_p1, %s3944_s10), 15  ;;  %s4885_s29 = smov 8  }
  0x57   : > { %4212 = vmatpush3.xpose.msk.msra.mxu0 %vm362_vm1, %v5097_v3  ;;  %4223 = vmatpush3.xpose.msk.msra.mxu1 %vm362_vm1, %v5100_v4  ;;  %v5169_v19 = vld [vmem:[%s5064_s14 + $0x4] sm:$0x3]  ;;  %v5172_v20 = vld [vmem:[%s5064_s14 + $0x6] sm:$0x3]  ;;  %v341_v22 = vld [vmem:[%s5072_s20 + $0x158] sm:$0xff]  ;;  %s3943_s22 = sshll.u32 %s280_s8, 3 }
  0x58   : > { %4213 = vmatprep.subr.mxu0 %v4878_v0  ;;  %4224 = vmatprep.subr.mxu1 %v4878_v0  ;;  %v340_v24 = vld [vmem:[%s5072_s20 + $0x150] sm:$0xff]  ;;  %v331_v25 = vld [vmem:[%s5072_s20 + $0x108] sm:$0xff]  ;;  %v330_v27 = vld [vmem:[%s5072_s20 + $0x100] sm:$0xff]  ;;  %s282_s5 = scalar_lea.vmem %s6005_s1, %s3943_s22  ;;  %s3945_s12 = sshll.u32 %s6026_s10, 2 }
  0x59   : > { %v339_v26 = vld [vmem:[%s5072_s20 + $0x148] sm:$0xff]  ;;  %v338_v28 = vld [vmem:[%s5072_s20 + $0x140] sm:$0xff]  ;;  %v349_v31 = vld [vmem:[%s5072_s20 + $0x198] sm:$0xff]  ;;  %s4886_s11 = smov 16   ;;  %p6018_p7 = scmp.ne.s32.totalorder %s6013_s27, 0 }
  0x5a   : > { %v5207_v29 = vld [vmem:[%s5064_s14 + $0x8] sm:$0x3]  ;;  %v5210_v30 = vld [vmem:[%s5064_s14 + $0xa] sm:$0x3]  ;;  %v348_v33 = vld [vmem:[%s5072_s20 + $0x190] sm:$0xff] }
  0x5b   : > { %4214 = vmatpush3.xpose.msk.msra.mxu0 %vm362_vm1, %v5109_v5  ;;  %4225 = vmatpush3.xpose.msk.msra.mxu1 %vm362_vm1, %v5112_v6  ;;  %v357_v32 = vld [vmem:[%s5072_s20 + $0x1d8] sm:$0xff]  ;;  %v356_v34 = vld [vmem:[%s5072_s20 + $0x1d0] sm:$0xff]  ;;  %v347_v35 = vld [vmem:[%s5072_s20 + $0x188] sm:$0xff] }
  0x5c   : > { %4215 = vmatprep.subr.mxu0 %v4878_v0  ;;  %4226 = vmatprep.subr.mxu1 %v4878_v0  ;;  %v355_v36 = vld [vmem:[%s5072_s20 + $0x1c8] sm:$0xff]  ;;  %v346_v37 = vld [vmem:[%s5072_s20 + $0x180] sm:$0xff]  ;;  %v305_v41 = vld [vmem:[%s5072_s20 + $0x38] sm:$0xff] }
  0x5d   : > { %v354_v38 = vld [vmem:[%s5072_s20 + $0x1c0] sm:$0xff]  ;;  %v5245_v39 = vld [vmem:[%s5064_s14 + $0xc] sm:$0x3]  ;;  %v5248_v40 = vld [vmem:[%s5064_s14 + $0xe] sm:$0x3]  ;;  %s5596_s14 = scalar_lea.vmem %s6008_s4, %s3945_s12 }
  0x5e   : > { %v313_v42 = vld [vmem:[%s5072_s20 + $0x78] sm:$0xff]  ;;  %v304_v43 = vld [vmem:[%s5072_s20 + $0x30] sm:$0xff]  ;;  %v303_v45 = vld [vmem:[%s5072_s20 + $0x28] sm:$0xff] }
  0x5f   : > { %4216 = vmatpush3.xpose.msk.msra.mxu0 %vm362_vm1, %v5121_v7  ;;  %4227 = vmatpush3.xpose.msk.msra.mxu1 %vm362_vm1, %v5124_v8  ;;  %v312_v44 = vld [vmem:[%s5072_s20 + $0x70] sm:$0xff]  ;;  %v311_v46 = vld [vmem:[%s5072_s20 + $0x68] sm:$0xff]  ;;  %v302_v47 = vld [vmem:[%s5072_s20 + $0x20] sm:$0xff] }
  0x60   : > { %4231 = vmatprep.subr.mxu0 %v4878_v0  ;;  %4242 = vmatprep.subr.mxu1 %v4878_v0  ;;  %v310_v48 = vld [vmem:[%s5072_s20 + $0x60] sm:$0xff]  ;;  %v321_v49 = vld [vmem:[%s5072_s20 + $0xb8] sm:$0xff]  ;;  %v320_v51 = vld [vmem:[%s5072_s20 + $0xb0] sm:$0xff] }
  0x61   : > { %v329_v50 = vld [vmem:[%s5072_s20 + $0xf8] sm:$0xff]  ;;  %v328_v52 = vld [vmem:[%s5072_s20 + $0xf0] sm:$0xff]  ;;  %v319_v53 = vld [vmem:[%s5072_s20 + $0xa8] sm:$0xff] }
  0x62   : > { %4218 = vmatmul.mubr.msk.f32.vlgmr.msra.gmra.mxu0 %vm362_vm1, %v5131_v9  ;;  %4229 = vmatmul.mubr.msk.f32.vlgmr.msra.gmra.mxu1 %vm362_vm1, %v5134_v10  ;;  %v327_v54 = vld [vmem:[%s5072_s20 + $0xe8] sm:$0xff]  ;;  %v318_v55 = vld [vmem:[%s5072_s20 + $0xa0] sm:$0xff]  ;;  %v337_v57 = vld [vmem:[%s5072_s20 + $0x138] sm:$0xff] }
  0x63   : > { %4232 = vmatpush3.xpose.msk.msra.mxu0 %vm362_vm1, %v317_v11  ;;  %4243 = vmatpush3.xpose.msk.msra.mxu1 %vm362_vm1, %v325_v12  ;;  %v326_v56 = vld [vmem:[%s5072_s20 + $0xe0] sm:$0xff]  ;;  %v345_v58 = vld [vmem:[%s5072_s20 + $0x178] sm:$0xff]  ;;  %v336_v59 = vld [vmem:[%s5072_s20 + $0x130] sm:$0xff] }
  0x64   : > { %4233 = vmatprep.subr.mxu0 %v4878_v0  ;;  %4244 = vmatprep.subr.mxu1 %v4878_v0  ;;  %v344_v60 = vld [vmem:[%s5072_s20 + $0x170] sm:$0xff]  ;;  %v335_v61 = vld [vmem:[%s5072_s20 + $0x128] sm:$0xff]  ;;  %v334_v63 = vld [vmem:[%s5072_s20 + $0x120] sm:$0xff] }
  0x65   : > { %4239 = vmatprep.mubr.msk.f32.mxu0 %vm4879_vm0, %v4878_v0  ;;  %4250 = vmatprep.mubr.msk.f32.mxu1 %vm4879_vm0, %v4878_v0  ;;  %v343_v62 = vld [vmem:[%s5072_s20 + $0x168] sm:$0xff]  ;;  %v361_v11 = vld [vmem:[%s5072_s20 + $0x1f8] sm:$0xff]  ;;  %v352_v12 = vld [vmem:[%s5072_s20 + $0x1b0] sm:$0xff] }
  0x67   : > { %4234 = vmatpush3.xpose.msk.msra.mxu0 %vm362_vm1, %v316_v13  ;;  %4245 = vmatpush3.xpose.msk.msra.mxu1 %vm362_vm1, %v324_v14  ;;  %v360_v13 = vld [vmem:[%s5072_s20 + $0x1f0] sm:$0xff]  ;;  %v351_v14 = vld [vmem:[%s5072_s20 + $0x1a8] sm:$0xff] }
  0x68   : > { %4235 = vmatprep.subr.mxu0 %v4878_v0  ;;  %4246 = vmatprep.subr.mxu1 %v4878_v0 }
  0x6b   : > { %4236 = vmatpush3.xpose.msk.msra.mxu0 %vm362_vm1, %v315_v15  ;;  %4247 = vmatpush3.xpose.msk.msra.mxu1 %vm362_vm1, %v323_v16  ;;  %v359_v15 = vld [vmem:[%s5072_s20 + $0x1e8] sm:$0xff]  ;;  %v350_v16 = vld [vmem:[%s5072_s20 + $0x1a0] sm:$0xff] }
  0x6c   : > { %4237 = vmatprep.subr.mxu0 %v4878_v0  ;;  %4248 = vmatprep.subr.mxu1 %v4878_v0 }
  0x6f   : > { %4238 = vmatpush3.xpose.msk.msra.mxu0 %vm362_vm1, %v314_v17  ;;  %4249 = vmatpush3.xpose.msk.msra.mxu1 %vm362_vm1, %v322_v18  ;;  %v358_v17 = vld [vmem:[%s5072_s20 + $0x1e0] sm:$0xff] }
  0x70   : > { %4253 = vmatprep.subr.mxu0 %v4878_v0  ;;  %4264 = vmatprep.subr.mxu1 %v4878_v0 }
  0x72   : > { %4240 = vmatmul.mubr.msk.f32.vlgmr.msra.gmra.mxu0 %vm362_vm1, %v5169_v19  ;;  %4251 = vmatmul.mubr.msk.f32.vlgmr.msra.gmra.mxu1 %vm362_vm1, %v5172_v20 }
  0x73   : > { %4254 = vmatpush3.xpose.msk.msra.mxu0 %vm362_vm1, %v333_v21  ;;  %4265 = vmatpush3.xpose.msk.msra.mxu1 %vm362_vm1, %v341_v22 }
  0x74   : > { %4255 = vmatprep.subr.mxu0 %v4878_v0  ;;  %4266 = vmatprep.subr.mxu1 %v4878_v0 }
  0x75   : > { %4261 = vmatprep.mubr.msk.f32.mxu0 %vm4879_vm0, %v4878_v0  ;;  %4272 = vmatprep.mubr.msk.f32.mxu1 %vm4879_vm0, %v4878_v0 }
  0x77   : > { %4256 = vmatpush3.xpose.msk.msra.mxu0 %vm362_vm1, %v332_v23  ;;  %4267 = vmatpush3.xpose.msk.msra.mxu1 %vm362_vm1, %v340_v24 }
  0x78   : > { %4257 = vmatprep.subr.mxu0 %v4878_v0  ;;  %4268 = vmatprep.subr.mxu1 %v4878_v0 }
  0x7b   : > { %4258 = vmatpush3.xpose.msk.msra.mxu0 %vm362_vm1, %v331_v25  ;;  %4269 = vmatpush3.xpose.msk.msra.mxu1 %vm362_vm1, %v339_v26 }
  0x7c   : > { %4259 = vmatprep.subr.mxu0 %v4878_v0  ;;  %4270 = vmatprep.subr.mxu1 %v4878_v0 }
  0x7f   : > { %4260 = vmatpush3.xpose.msk.msra.mxu0 %vm362_vm1, %v330_v27  ;;  %4271 = vmatpush3.xpose.msk.msra.mxu1 %vm362_vm1, %v338_v28 }
  0x80   : > { %4275 = vmatprep.subr.mxu0 %v4878_v0  ;;  %4286 = vmatprep.subr.mxu1 %v4878_v0 }
  0x82   : > { %4262 = vmatmul.mubr.msk.f32.vlgmr.msra.gmra.mxu0 %vm362_vm1, %v5207_v29  ;;  %4273 = vmatmul.mubr.msk.f32.vlgmr.msra.gmra.mxu1 %vm362_vm1, %v5210_v30 }
  0x83   : > { %4276 = vmatpush3.xpose.msk.msra.mxu0 %vm362_vm1, %v349_v31  ;;  %4287 = vmatpush3.xpose.msk.msra.mxu1 %vm362_vm1, %v357_v32 }
  0x84   : > { %4277 = vmatprep.subr.mxu0 %v4878_v0  ;;  %4288 = vmatprep.subr.mxu1 %v4878_v0 }
  0x85   : > { %4283 = vmatprep.mubr.msk.f32.mxu0 %vm4879_vm0, %v4878_v0  ;;  %4294 = vmatprep.mubr.msk.f32.mxu1 %vm4879_vm0, %v4878_v0 }
  0x87   : > { %4278 = vmatpush3.xpose.msk.msra.mxu0 %vm362_vm1, %v348_v33  ;;  %4289 = vmatpush3.xpose.msk.msra.mxu1 %vm362_vm1, %v356_v34 }
  0x88   : > { %4279 = vmatprep.subr.mxu0 %v4878_v0  ;;  %4290 = vmatprep.subr.mxu1 %v4878_v0 }
  0x8b   : > { %4280 = vmatpush3.xpose.msk.msra.mxu0 %vm362_vm1, %v347_v35  ;;  %4291 = vmatpush3.xpose.msk.msra.mxu1 %vm362_vm1, %v355_v36 }
  0x8c   : > { %4281 = vmatprep.subr.mxu0 %v4878_v0  ;;  %4292 = vmatprep.subr.mxu1 %v4878_v0 }
  0x8f   : > { %4282 = vmatpush3.xpose.msk.msra.mxu0 %vm362_vm1, %v346_v37  ;;  %4293 = vmatpush3.xpose.msk.msra.mxu1 %vm362_vm1, %v354_v38 }
  0x90   : > { %4297 = vmatprep.subr.mxu0 %v4878_v0  ;;  %4308 = vmatprep.subr.mxu1 %v4878_v0 }
  0x92   : > { %4284 = vmatmul.mubr.msk.f32.vlgmr.msra.gmra.mxu0 %vm362_vm1, %v5245_v39  ;;  %4295 = vmatmul.mubr.msk.f32.vlgmr.msra.gmra.mxu1 %vm362_vm1, %v5248_v40 }
  0x93   : > { %4298 = vmatpush3.xpose.msk.msra.mxu0 %vm362_vm1, %v305_v41  ;;  %4309 = vmatpush3.xpose.msk.msra.mxu1 %vm362_vm1, %v313_v42 }
  0x94   : > { %4299 = vmatprep.subr.mxu0 %v4878_v0  ;;  %4310 = vmatprep.subr.mxu1 %v4878_v0 }
  0x95   : > { %4305 = vmatprep.mubr.msk.f32.mxu0 %vm4879_vm0, %v4878_v0  ;;  %4316 = vmatprep.mubr.msk.f32.mxu1 %vm4879_vm0, %v4878_v0 }
  0x97   : > { %4300 = vmatpush3.xpose.msk.msra.mxu0 %vm362_vm1, %v304_v43  ;;  %4311 = vmatpush3.xpose.msk.msra.mxu1 %vm362_vm1, %v312_v44 }
  0x98   : > { %4301 = vmatprep.subr.mxu0 %v4878_v0  ;;  %4312 = vmatprep.subr.mxu1 %v4878_v0 }
  0x9b   : > { %4302 = vmatpush3.xpose.msk.msra.mxu0 %vm362_vm1, %v303_v45  ;;  %4313 = vmatpush3.xpose.msk.msra.mxu1 %vm362_vm1, %v311_v46 }
  0x9c   : > { %4303 = vmatprep.subr.mxu0 %v4878_v0  ;;  %4314 = vmatprep.subr.mxu1 %v4878_v0 }
  0x9f   : > { %4304 = vmatpush3.xpose.msk.msra.mxu0 %vm362_vm1, %v302_v47  ;;  %4315 = vmatpush3.xpose.msk.msra.mxu1 %vm362_vm1, %v310_v48 }
  0xa0   : > { %4319 = vmatprep.subr.mxu0 %v4878_v0  ;;  %4330 = vmatprep.subr.mxu1 %v4878_v0 }
  0xa2   : > { %4306 = vmatmul.mubr.msk.f32.vlgmr.msra.gmra.mxu0 %vm362_vm1, %v5131_v9  ;;  %4317 = vmatmul.mubr.msk.f32.vlgmr.msra.gmra.mxu1 %vm362_vm1, %v5134_v10  ;;  %v342_v9 = vld [vmem:[%s5072_s20 + $0x160] sm:$0xff]  ;;  %v353_v10 = vld [vmem:[%s5072_s20 + $0x1b8] sm:$0xff] }
  0xa3   : > { %4320 = vmatpush3.xpose.msk.msra.mxu0 %vm362_vm1, %v321_v49  ;;  %4331 = vmatpush3.xpose.msk.msra.mxu1 %vm362_vm1, %v329_v50 }
  0xa4   : > { %4321 = vmatprep.subr.mxu0 %v4878_v0  ;;  %4332 = vmatprep.subr.mxu1 %v4878_v0 }
  0xa5   : > { %4327 = vmatprep.mubr.msk.f32.mxu0 %vm4879_vm0, %v4878_v0  ;;  %4338 = vmatprep.mubr.msk.f32.mxu1 %vm4879_vm0, %v4878_v0 }
  0xa7   : > { %4322 = vmatpush3.xpose.msk.msra.mxu0 %vm362_vm1, %v320_v51  ;;  %4333 = vmatpush3.xpose.msk.msra.mxu1 %vm362_vm1, %v328_v52 }
  0xa8   : > { %4323 = vmatprep.subr.mxu0 %v4878_v0  ;;  %4334 = vmatprep.subr.mxu1 %v4878_v0 }
  0xab   : > { %4324 = vmatpush3.xpose.msk.msra.mxu0 %vm362_vm1, %v319_v53  ;;  %4335 = vmatpush3.xpose.msk.msra.mxu1 %vm362_vm1, %v327_v54 }
  0xac   : > { %4325 = vmatprep.subr.mxu0 %v4878_v0  ;;  %4336 = vmatprep.subr.mxu1 %v4878_v0 }
  0xaf   : > { %4326 = vmatpush3.xpose.msk.msra.mxu0 %vm362_vm1, %v318_v55  ;;  %4337 = vmatpush3.xpose.msk.msra.mxu1 %vm362_vm1, %v326_v56 }
  0xb0   : > { %4341 = vmatprep.subr.mxu0 %v4878_v0  ;;  %4352 = vmatprep.subr.mxu1 %v4878_v0 }
  0xb2   : > { %4328 = vmatmul.mubr.msk.f32.vlgmr.msra.gmra.mxu0 %vm362_vm1, %v5169_v19  ;;  %4339 = vmatmul.mubr.msk.f32.vlgmr.msra.gmra.mxu1 %vm362_vm1, %v5172_v20 }
  0xb3   : > { %4342 = vmatpush3.xpose.msk.msra.mxu0 %vm362_vm1, %v337_v57  ;;  %4353 = vmatpush3.xpose.msk.msra.mxu1 %vm362_vm1, %v345_v58 }
  0xb4   : > { %4343 = vmatprep.subr.mxu0 %v4878_v0  ;;  %4354 = vmatprep.subr.mxu1 %v4878_v0 }
  0xb5   : > { %4349 = vmatprep.mubr.msk.f32.mxu0 %vm4879_vm0, %v4878_v0  ;;  %4360 = vmatprep.mubr.msk.f32.mxu1 %vm4879_vm0, %v4878_v0 }
  0xb7   : > { %4344 = vmatpush3.xpose.msk.msra.mxu0 %vm362_vm1, %v336_v59  ;;  %4355 = vmatpush3.xpose.msk.msra.mxu1 %vm362_vm1, %v344_v60 }
  0xb8   : > { %4345 = vmatprep.subr.mxu0 %v4878_v0  ;;  %4356 = vmatprep.subr.mxu1 %v4878_v0 }
  0xbb   : > { %4346 = vmatpush3.xpose.msk.msra.mxu0 %vm362_vm1, %v335_v61  ;;  %4357 = vmatpush3.xpose.msk.msra.mxu1 %vm362_vm1, %v343_v62 }
  0xbc   : > { %4347 = vmatprep.subr.mxu0 %v4878_v0  ;;  %4358 = vmatprep.subr.mxu1 %v4878_v0 }
  0xbf   : > { %4348 = vmatpush3.xpose.msk.msra.mxu0 %vm362_vm1, %v334_v63  ;;  %4359 = vmatpush3.xpose.msk.msra.mxu1 %vm362_vm1, %v342_v9 }
  0xc0   : > { %4363 = vmatprep.subr.mxu0 %v4878_v0  ;;  %4374 = vmatprep.subr.mxu1 %v4878_v0 }
  0xc2   : > { %4350 = vmatmul.mubr.msk.f32.vlgmr.msra.gmra.mxu0 %vm362_vm1, %v5207_v29  ;;  %4361 = vmatmul.mubr.msk.f32.vlgmr.msra.gmra.mxu1 %vm362_vm1, %v5210_v30 }
  0xc3   : > { %4364 = vmatpush3.xpose.msk.msra.mxu0 %vm362_vm1, %v353_v10  ;;  %4375 = vmatpush3.xpose.msk.msra.mxu1 %vm362_vm1, %v361_v11 }
  0xc4   : > { %4365 = vmatprep.subr.mxu0 %v4878_v0  ;;  %4376 = vmatprep.subr.mxu1 %v4878_v0 }
  0xc5   : > { %4371 = vmatprep.mubr.msk.f32.mxu0 %vm4879_vm0, %v4878_v0  ;;  %4382 = vmatprep.mubr.msk.f32.mxu1 %vm4879_vm0, %v4878_v0 }
  0xc7   : > { %4366 = vmatpush3.xpose.msk.msra.mxu0 %vm362_vm1, %v352_v12  ;;  %4377 = vmatpush3.xpose.msk.msra.mxu1 %vm362_vm1, %v360_v13 }
  0xc8   : > { %4367 = vmatprep.subr.mxu0 %v4878_v0  ;;  %4378 = vmatprep.subr.mxu1 %v4878_v0 }
  0xcb   : > { %4368 = vmatpush3.xpose.msk.msra.mxu0 %vm362_vm1, %v351_v14  ;;  %4379 = vmatpush3.xpose.msk.msra.mxu1 %vm362_vm1, %v359_v15 }
  0xcc   : > { %4369 = vmatprep.subr.mxu0 %v4878_v0  ;;  %4380 = vmatprep.subr.mxu1 %v4878_v0 }
  0xcf   : > { %4370 = vmatpush3.xpose.msk.msra.mxu0 %vm362_vm1, %v350_v16  ;;  %4381 = vmatpush3.xpose.msk.msra.mxu1 %vm362_vm1, %v358_v17 }
  0xd0   : > { %4385 = vmatprep.subr.mxu0 %v4878_v0  ;;  %4396 = vmatprep.subr.mxu1 %v4878_v0 }
  0xd2   : > { %4372 = vmatmul.mubr.msk.f32.vlgmr.msra.gmra.mxu0 %vm362_vm1, %v5245_v39  ;;  %4383 = vmatmul.mubr.msk.f32.vlgmr.msra.gmra.mxu1 %vm362_vm1, %v5248_v40 }
  0xd3   : > { %4386 = vmatpush3.msra.mxu0 %v5085_v1  ;;  %4393 = vmatprep.mubr.msk.f32.mxu0 %vm4879_vm0, %v4878_v0 }
  0xd4   : > { %4387 = vmatprep.subr.mxu0 %v4878_v0  ;;  %4397 = vmatpush3.msra.mxu1 %v5088_v2 }
  0xd5   : > { %4388 = vmatpush3.msra.mxu0 %v5097_v3  ;;  %4398 = vmatprep.subr.mxu1 %v4878_v0 }
  0xd6   : > { %4389 = vmatprep.subr.mxu0 %v4878_v0  ;;  %4399 = vmatpush3.msra.mxu1 %v5100_v4 }
  0xd7   : > { %4390 = vmatpush3.msra.mxu0 %v5109_v5  ;;  %4400 = vmatprep.subr.mxu1 %v4878_v0 }
  0xd8   : > { %4391 = vmatprep.subr.mxu0 %v4878_v0  ;;  %4401 = vmatpush3.msra.mxu1 %v5112_v6 }
  0xd9   : > { %4392 = vmatpush3.msra.mxu0 %v5121_v7  ;;  %4402 = vmatprep.subr.mxu1 %v4878_v0 }
  0xda   : > { %4407 = vmatprep.subr.mxu0 %v4878_v0  ;;  %4403 = vmatpush3.msra.mxu1 %v5124_v8 }
  0xdb   : > { %4404 = vmatprep.mubr.msk.f32.mxu1 %vm4879_vm0, %v4878_v0  ;;  %4418 = vmatprep.subr.mxu1 %v4878_v0 }
 0x122   : > { %v444_v1 = vpop.f32.mrf.mxu0  ;;  %v529_v2 = vpop.f32.mrf.mxu1 }
 0x124   : > { %v4219_v3 = vpop.f32.mrf.mxu0  ;;  %v4230_v4 = vpop.f32.mrf.mxu1 }
 0x132   : > { %v614_v5 = vpop.f32.mrf.mxu0  ;;  %v699_v18 = vpop.f32.mrf.mxu1 }
 0x134   : > { %v4241_v6 = vpop.f32.mrf.mxu0  ;;  %v4252_v19 = vpop.f32.mrf.mxu1 }
 0x142   : > { %v5404_v7 = vpop.f32.mrf.mxu0  ;;  %v5406_v20 = vpop.f32.mrf.mxu1 }
 0x144   : > { %v4263_v21 = vpop.f32.mrf.mxu0  ;;  %v4274_v22 = vpop.f32.mrf.mxu1 }
 0x152   : > { %v5408_v8 = vpop.f32.mrf.mxu0  ;;  %v5410_v23 = vpop.f32.mrf.mxu1 }
 0x154   : > { %v4285_v24 = vpop.f32.mrf.mxu0  ;;  %v4296_v25 = vpop.f32.mrf.mxu1 }
 0x162   : > { %v1121_v26 = vpop.f32.mrf.mxu0  ;;  %v1203_v27 = vpop.f32.mrf.mxu1 }
 0x163   : > { %v1707_v28 = vrot.slane %v1121_v26, 1  ;;  %v1731_v29 = vrot.slane %v1121_v26, 7  ;;  %v1708_v30 = vrot.slane %v1203_v27, 1  ;;  %v1732_v31 = vrot.slane %v1203_v27, 7 }
 0x164   : > { %v4307_v32 = vpop.f32.mrf.mxu0  ;;  %v4318_v33 = vpop.f32.mrf.mxu1 }
 0x165   : > { %v1723_v34 = vsub.f32 %v444_v1, %v1707_v28  ;;  %v1747_v35 = vadd.f32 %v1731_v29, %v444_v1  ;;  %v1724_v36 = vsub.f32 %v529_v2, %v1708_v30  ;;  %v1748_v37 = vadd.f32 %v1732_v31, %v529_v2 }
 0x167   : > { %v1763_v38 = vmul.f32 %v1747_v35, %v1747_v35  ;;  %v1764_v39 = vmul.f32 %v1748_v37, %v1748_v37  ;;  %v1755_v40 = vmul.f32 %v1723_v34, %v1723_v34  ;;  %v1756_v42 = vmul.f32 %v1724_v36, %v1724_v36 }
 0x169   : > { %v1779_v41 = vrot.slane %v1763_v38, 1  ;;  %v1780_v43 = vrot.slane %v1764_v39, 1 }
 0x16b   : > { %v1795_v44 = vadd.f32 %v1779_v41, %v1755_v40  ;;  %v1796_v45 = vadd.f32 %v1780_v43, %v1756_v42 }
 0x16d   : > { %4626 = vrsqrt.f32 %v1796_v45  ;;  %vm1812_vm2 = vcmp.eq.f32.partialorder %v1796_v45, inf  ;;  %v1815_v14 = vand.u32 2147483648, %v1796_v45  ;;  %vm1814_vm4 = vcmp.eq.f32.partialorder %v1796_v45, 0.0 }
 0x16e   : > { %4628 = vrsqrt.f32 %v1795_v44  ;;  %vm1805_vm5 = vcmp.eq.f32.partialorder %v1795_v44, inf  ;;  %v1808_v2 = vand.u32 2147483648, %v1795_v44  ;;  %vm1807_vm6 = vcmp.eq.f32.partialorder %v1795_v44, 0.0 }
 0x172   : > { %v1285_v46 = vpop.f32.mrf.mxu0  ;;  %v1367_v47 = vpop.f32.mrf.mxu1 }
 0x173   : > { %v1709_v48 = vrot.slane %v1285_v46, 1  ;;  %v1733_v49 = vrot.slane %v1285_v46, 7  ;;  %v1710_v50 = vrot.slane %v1367_v47, 1  ;;  %v1734_v51 = vrot.slane %v1367_v47, 7 }
 0x174   : > { %v4329_v52 = vpop.f32.mrf.mxu0  ;;  %v4340_v53 = vpop.f32.mrf.mxu1 }
 0x175   : > { %v1725_v54 = vsub.f32 %v614_v5, %v1709_v48  ;;  %v1749_v55 = vadd.f32 %v1733_v49, %v614_v5  ;;  %v1726_v56 = vsub.f32 %v699_v18, %v1710_v50  ;;  %v1750_v57 = vadd.f32 %v1734_v51, %v699_v18 }
 0x177   : > { %v1765_v58 = vmul.f32 %v1749_v55, %v1749_v55  ;;  %v1766_v59 = vmul.f32 %v1750_v57, %v1750_v57  ;;  %v1757_v60 = vmul.f32 %v1725_v54, %v1725_v54  ;;  %v1758_v62 = vmul.f32 %v1726_v56, %v1726_v56 }
 0x179   : > { %v1781_v61 = vrot.slane %v1765_v58, 1  ;;  %v1782_v63 = vrot.slane %v1766_v59, 1 }
 0x17a   : > { %v4627_v9 = vpop.eup %4626 }
 0x17b   : > { %v4629_v10 = vpop.eup %4628  ;;  %v1797_v11 = vadd.f32 %v1781_v61, %v1757_v60  ;;  %v5412_v12 = vadd.f32 %v1782_v63, %v1758_v62  ;;  %v1811_v13 = vmul.f32 %v4627_v9, %v1796_v45 }
 0x17c   : > { %v1804_v15 = vmul.f32 %v4629_v10, %v1795_v44 }
 0x17d   : > { %v1813_v16 = vsel %vm1812_vm2, %v1796_v45, %v1811_v13  ;;  %4630 = vrsqrt.f32 %v1797_v11  ;;  %vm1819_vm8 = vcmp.eq.f32.partialorder %v1797_v11, inf  ;;  %vm1821_vm9 = vcmp.eq.f32.partialorder %v1797_v11, 0.0 }
 0x17e   : > { %v1816_v17 = vsel %vm1814_vm4, %v1815_v14, %v1813_v16  ;;  %v1806_v1 = vsel %vm1805_vm5, %v1795_v44, %v1804_v15  ;;  %4632 = vrsqrt.f32 %v5412_v12  ;;  %vm1826_vm10 = vcmp.eq.f32.partialorder %v5412_v12, inf }
 0x17f   : > { %1901 = vrot.lane.b32.xlu1 %v1816_v17, %s4880_s26  ;;  %v1915_v3 = vrot.slane %v1816_v17, 7  ;;  %1869 = vrot.lane.b32.xlu0 %v1816_v17, %s4881_s25  ;;  %v1809_v4 = vsel %vm1807_vm6, %v1808_v2, %v1806_v1  ;;  %v1829_v43 = vand.u32 2147483648, %v5412_v12  ;;  %vm1828_vm11 = vcmp.eq.f32.partialorder %v5412_v12, 0.0 }
 0x180   : > { %vm1928_vm5 = vcmask 1045509  }
 0x181   : > { %v1917_v5 = vsel %vm1916_vm3, %v1915_v3, %v1809_v4 }
 0x182   : > { %v1449_v18 = vpop.f32.mrf.mxu0  ;;  %v1531_v6 = vpop.f32.mrf.mxu1 }
 0x183   : > { %v1711_v19 = vrot.slane %v1449_v18, 1  ;;  %v1735_v21 = vrot.slane %v1449_v18, 7  ;;  %v1712_v22 = vrot.slane %v1531_v6, 1  ;;  %v1736_v24 = vrot.slane %v1531_v6, 7  ;;  %1885 = vrot.lane.b32.xlu0 %v1816_v17, %s4882_s6 }
 0x184   : > { %v4351_v25 = vpop.f32.mrf.mxu0  ;;  %v4362_v26 = vpop.f32.mrf.mxu1 }
 0x185   : > { %v1727_v27 = vsub.f32 %v5404_v7, %v1711_v19  ;;  %v1751_v28 = vadd.f32 %v1735_v21, %v5404_v7  ;;  %v1728_v29 = vsub.f32 %v5406_v20, %v1712_v22  ;;  %v1752_v30 = vadd.f32 %v1736_v24, %v5406_v20 }
 0x186   : > { %v1822_v20 = vand.u32 2147483648, %v1797_v11 }
 0x187   : > { %v1767_v31 = vmul.f32 %v1751_v28, %v1751_v28  ;;  %v1768_v32 = vmul.f32 %v1752_v30, %v1752_v30  ;;  %1867 = vrot.lane.b32.xlu0 %v1809_v4, %s4881_s25  ;;  %v1759_v33 = vmul.f32 %v1727_v27, %v1727_v27  ;;  %v1760_v35 = vmul.f32 %v1728_v29, %v1728_v29 }
 0x189   : > { %v1783_v34 = vrot.slane %v1767_v31, 1  ;;  %v1784_v36 = vrot.slane %v1768_v32, 1 }
 0x18a   : > { %v4631_v37 = vpop.eup %4630 }
 0x18b   : > { %v4633_v38 = vpop.eup %4632  ;;  %v5424_v39 = vadd.f32 %v1783_v34, %v1759_v33  ;;  %v5426_v40 = vadd.f32 %v1784_v36, %v1760_v35  ;;  %1883 = vrot.lane.b32.xlu0 %v1809_v4, %s4882_s6  ;;  %v1818_v7 = vmul.f32 %v4631_v37, %v1797_v11 }
 0x18c   : > { %v1825_v41 = vmul.f32 %v4633_v38, %v5412_v12 }
 0x18d   : > { %v1820_v42 = vsel %vm1819_vm8, %v1797_v11, %v1818_v7  ;;  %4634 = vrsqrt.f32 %v5424_v39  ;;  %vm1833_vm14 = vcmp.eq.f32.partialorder %v5424_v39, inf  ;;  %vm1835_vm15 = vcmp.eq.f32.partialorder %v5424_v39, 0.0 }
 0x18e   : > { %v1823_v44 = vsel %vm1821_vm9, %v1822_v20, %v1820_v42  ;;  %v1827_v45 = vsel %vm1826_vm10, %v5412_v12, %v1825_v41  ;;  %4636 = vrsqrt.f32 %v5426_v40  ;;  %vm1840_vm2 = vcmp.eq.f32.partialorder %v5426_v40, inf }
 0x18f   : > { %1899 = vrot.lane.b32.xlu0 %v1809_v4, %s4880_s26  ;;  %1871 = vrot.lane.b32.xlu1 %v1823_v44, %s4881_s25  ;;  %v1918_v46 = vrot.slane %v1823_v44, 6  ;;  %v1830_v47 = vsel %vm1828_vm11, %v1829_v43, %v1827_v45  ;;  %v1843_v3 = vand.u32 2147483648, %v5426_v40  ;;  %vm1842_vm4 = vcmp.eq.f32.partialorder %v5426_v40, 0.0 }
 0x190   : > { %v1921_v48 = vrot.slane %v1830_v47, 5  ;;  %vm1931_vm11 = vcmask 1046534  }
 0x191   : > { %v1920_v49 = vsel %vm1919_vm7, %v1918_v46, %v1917_v5 }
 0x192   : > { %v1613_v50 = vpop.f32.mrf.mxu0  ;;  %v1695_v51 = vpop.f32.mrf.mxu1  ;;  %v1923_v52 = vsel %vm1922_vm12, %v1921_v48, %v1920_v49 }
 0x193   : > { %v1713_v53 = vrot.slane %v1613_v50, 1  ;;  %v1737_v54 = vrot.slane %v1613_v50, 7  ;;  %v1714_v55 = vrot.slane %v1695_v51, 1  ;;  %v1738_v56 = vrot.slane %v1695_v51, 7  ;;  %1887 = vrot.lane.b32.xlu0 %v1823_v44, %s4882_s6  ;;  %1903 = vrot.lane.b32.xlu1 %v1823_v44, %s4880_s26 }
 0x194   : > { %v4373_v57 = vpop.f32.mrf.mxu0  ;;  %v4384_v58 = vpop.f32.mrf.mxu1 }
 0x195   : > { %v1729_v59 = vsub.f32 %v5408_v8, %v1713_v53  ;;  %v1753_v60 = vadd.f32 %v1737_v54, %v5408_v8  ;;  %v1730_v61 = vsub.f32 %v5410_v23, %v1714_v55  ;;  %v1754_v62 = vadd.f32 %v1738_v56, %v5410_v23 }
 0x196   : > { %v1836_v23 = vand.u32 2147483648, %v5424_v39  ;;  %v1987_v54 = vlaneseq  ;;  %v4883_v55 = vmov 1983009808  }
 0x197   : > { %v1769_v63 = vmul.f32 %v1753_v60, %v1753_v60  ;;  %v1770_v9 = vmul.f32 %v1754_v62, %v1754_v62  ;;  %1873 = vrot.lane.b32.xlu1 %v1830_v47, %s4881_s25  ;;  %v1761_v10 = vmul.f32 %v1729_v59, %v1729_v59  ;;  %v1762_v12 = vmul.f32 %v1730_v61, %v1730_v61 }
 0x198   : > { %v1985_v56 = vunpack.c.l.s4 %v4883_v55  ;;  %v4884_v62 = vmov 1934713408  }
 0x199   : > { %v1785_v11 = vrot.slane %v1769_v63, 1  ;;  %v1786_v13 = vrot.slane %v1770_v9, 1  ;;  %v2017_v63 = vunpack.c.l.s4 %v4884_v62 }
 0x19a   : > { %v4635_v14 = vpop.eup %4634 }
 0x19b   : > { %v4637_v15 = vpop.eup %4636  ;;  %v1801_v16 = vadd.f32 %v1785_v11, %v1761_v10  ;;  %v1802_v17 = vadd.f32 %v1786_v13, %v1762_v12  ;;  %1889 = vrot.lane.b32.xlu1 %v1830_v47, %s4882_s6  ;;  %v1832_v8 = vmul.f32 %v4635_v14, %v5424_v39  ;;  %v5477_v12 = vshrl.u32 %v1987_v54, 7 }
 0x19c   : > { %v1839_v1 = vmul.f32 %v4637_v15, %v5426_v40 }
 0x19d   : > { %v1834_v2 = vsel %vm1833_vm14, %v5424_v39, %v1832_v8  ;;  %4638 = vrsqrt.f32 %v1801_v16  ;;  %vm1847_vm6 = vcmp.eq.f32.partialorder %v1801_v16, inf  ;;  %v1850_v27 = vand.u32 2147483648, %v1801_v16 }
 0x19e   : > { %v1837_v4 = vsel %vm1835_vm15, %v1836_v23, %v1834_v2  ;;  %v1841_v5 = vsel %vm1840_vm2, %v5426_v40, %v1839_v1  ;;  %4640 = vrsqrt.f32 %v1802_v17  ;;  %vm1849_vm8 = vcmp.eq.f32.partialorder %v1801_v16, 0.0 }
 0x19f   : > { %1905 = vrot.lane.b32.xlu1 %v1830_v47, %s4880_s26  ;;  %1875 = vrot.lane.b32.xlu0 %v1837_v4, %s4881_s25  ;;  %v1924_v18 = vrot.slane %v1837_v4, 4  ;;  %v1844_v6 = vsel %vm1842_vm4, %v1843_v3, %v1841_v5  ;;  %vm1854_vm9 = vcmp.eq.f32.partialorder %v1802_v17, inf  ;;  %v1857_v30 = vand.u32 2147483648, %v1802_v17 }
 0x1a0   : > { %v1927_v19 = vrot.slane %v1844_v6, 3  ;;  %vm1856_vm10 = vcmp.eq.f32.partialorder %v1802_v17, 0.0  ;;  %vm1934_vm14 = vcmask 1047559   ;;  %vm2050_vm15 = vcmask 60416  }
 0x1a1   : > { %v1926_v21 = vsel %vm1925_vm13, %v1924_v18, %v1923_v52  ;;  %vm2500_vm2 = vcmask 64512   ;;  %vm2509_vm4 = vcmask 130048  }
 0x1a2   : > { %v1929_v22 = vsel %vm1928_vm5, %v1927_v19, %v1926_v21 }
 0x1a3   : > { %1891 = vrot.lane.b32.xlu1 %v1837_v4, %s4882_s6  ;;  %1907 = vrot.lane.b32.xlu0 %v1837_v4, %s4880_s26 }
 0x1a7   : > { %1877 = vrot.lane.b32.xlu1 %v1844_v6, %s4881_s25  ;;  %1893 = vrot.lane.b32.xlu0 %v1844_v6, %s4882_s6 }
 0x1aa   : > { %v4639_v24 = vpop.eup %4638 }
 0x1ab   : > { %v4641_v25 = vpop.eup %4640  ;;  %1909 = vrot.lane.b32.xlu1 %v1844_v6, %s4880_s26  ;;  %v1846_v26 = vmul.f32 %v4639_v24, %v1801_v16 }
 0x1ac   : > { %v1853_v28 = vmul.f32 %v4641_v25, %v1802_v17 }
 0x1ad   : > { %v1848_v29 = vsel %vm1847_vm6, %v1801_v16, %v1846_v26  ;;  %v1986_v16 = vunpack.c.0.s8 %v1985_v56  ;;  %vm2518_vm6 = vcmask 195584  }
 0x1ae   : > { %v1851_v31 = vsel %vm1849_vm8, %v1850_v27, %v1848_v29  ;;  %v1855_v32 = vsel %vm1854_vm9, %v1802_v17, %v1853_v28  ;;  %vm2527_vm8 = vcmask 261120  }
 0x1af   : > { %1895 = vrot.lane.b32.xlu1 %v1851_v31, %s4882_s6  ;;  %v1930_v33 = vrot.slane %v1851_v31, 2  ;;  %1879 = vrot.lane.b32.xlu0 %v1851_v31, %s4881_s25  ;;  %v1858_v34 = vsel %vm1856_vm10, %v1857_v30, %v1855_v32 }
 0x1b0   : > { %v1933_v35 = vrot.slane %v1858_v34, 1 }
 0x1b1   : > { %v1932_v36 = vsel %vm1931_vm11, %v1930_v33, %v1929_v22 }
 0x1b2   : > { %v5471_v37 = vsel %vm1934_vm14, %v1933_v35, %v1932_v36  ;;  %v2018_v36 = vunpack.c.0.s8 %v2017_v63 }
 0x1b3   : > { %1881 = vrot.lane.b32.xlu1 %v1858_v34, %s4881_s25  ;;  %1911 = vrot.lane.b32.xlu0 %v1851_v31, %s4880_s26  ;;  %s4043_s25 = sshll.u32 %s4935_s19, 7  ;;  %s4888_s19 = smov [#allocation7]  }
 0x1b4   : > { %s5965_s30 = scalar_lea.hbm %s6007_s3, %s4043_s25  ;;  %s4806_s12 = sshll.u32 %s4888_s19, 4  ;;  %s4807_s12 = int_to_ptr.vmem [resolvable:$false] %s4806_s12 }
 0x1b5   : > { %s4808_s9 = scalar_lea.vmem %s4807_s12, 256 }
 0x1b7   : > { %1913 = vrot.lane.b32.xlu1 %v1858_v34, %s4880_s26  ;;  %1897 = vrot.lane.b32.xlu0 %v1858_v34, %s4882_s6  ;;  %s4887_s26 = smov 24  }
 0x1f1   : > { %v1870_v38 = vpop.permute.xlu0 %1869  ;;  %v1902_v7 = vpop.permute.xlu1 %1901 }
 0x1f2   : > { %v1936_v57 = vrot.slane %v1870_v38, 7  ;;  %v1964_v9 = vrot.slane %v1902_v7, 7 }
 0x1f5   : > { %v1886_v39 = vpop.permute.xlu0 %1885 }
 0x1f6   : > { %v1950_v58 = vrot.slane %v1886_v39, 7 }
 0x1f9   : > { %v1868_v40 = vpop.permute.xlu0 %1867 }
 0x1fa   : > { %v1937_v13 = vsel %vm1916_vm3, %v1936_v57, %v1868_v40 }
 0x1fd   : > { %v1884_v20 = vpop.permute.xlu0 %1883 }
 0x1fe   : > { %v1951_v14 = vsel %vm1916_vm3, %v1950_v58, %v1884_v20 }
 0x201   : > { %v1872_v41 = vpop.permute.xlu1 %1871  ;;  %v1900_v43 = vpop.permute.xlu0 %1899 }
 0x202   : > { %v1938_v59 = vrot.slane %v1872_v41, 6  ;;  %v1965_v17 = vsel %vm1916_vm3, %v1964_v9, %v1900_v43 }
 0x204   : > { %v1939_v2 = vsel %vm1919_vm7, %v1938_v59, %v1937_v13 }
 0x205   : > { %v1904_v42 = vpop.permute.xlu1 %1903  ;;  %v1888_v45 = vpop.permute.xlu0 %1887 }
 0x206   : > { %v1952_v10 = vrot.slane %v1888_v45, 6  ;;  %v1966_v11 = vrot.slane %v1904_v42, 6  ;;  %v5498_v45 = vsub.s32 %v1986_v16, %v5477_v12 }
 0x208   : > { %v1953_v19 = vsel %vm1919_vm7, %v1952_v10, %v1951_v14  ;;  %v1967_v21 = vsel %vm1919_vm7, %v1966_v11, %v1965_v17 }
 0x209   : > { %v1874_v44 = vpop.permute.xlu1 %1873 }
 0x20a   : > { %v1940_v15 = vrot.slane %v1874_v44, 5 }
 0x20c   : > { %v1941_v25 = vsel %vm1922_vm12, %v1940_v15, %v1939_v2 }
 0x20d   : > { %v1890_v46 = vpop.permute.xlu1 %1889 }
 0x20e   : > { %v1954_v8 = vrot.slane %v1890_v46, 5 }
 0x210   : > { %v1955_v29 = vsel %vm1922_vm12, %v1954_v8, %v1953_v19 }
 0x211   : > { %v1906_v47 = vpop.permute.xlu1 %1905  ;;  %v1876_v48 = vpop.permute.xlu0 %1875 }
 0x212   : > { %v1968_v23 = vrot.slane %v1906_v47, 5  ;;  %v1942_v1 = vrot.slane %v1876_v48, 4 }
 0x214   : > { %v1969_v30 = vsel %vm1922_vm12, %v1968_v23, %v1967_v21  ;;  %v1943_v31 = vsel %vm1925_vm13, %v1942_v1, %v1941_v25  ;;  %v2163_v21 = vsub.s32 3, %v5477_v12 }
 0x215   : > { %v1892_v49 = vpop.permute.xlu1 %1891  ;;  %v1908_v50 = vpop.permute.xlu0 %1907 }
 0x216   : > { %v1956_v3 = vrot.slane %v1892_v49, 4  ;;  %v1970_v4 = vrot.slane %v1908_v50, 4 }
 0x218   : > { %v1957_v33 = vsel %vm1925_vm13, %v1956_v3, %v1955_v29  ;;  %v1971_v34 = vsel %vm1925_vm13, %v1970_v4, %v1969_v30  ;;  %v2142_v4 = vsub.s32 0, %v5477_v12 }
 0x219   : > { %v1878_v51 = vpop.permute.xlu1 %1877  ;;  %v1894_v52 = vpop.permute.xlu0 %1893 }
 0x21a   : > { %v1944_v5 = vrot.slane %v1878_v51, 3  ;;  %v1958_v22 = vrot.slane %v1894_v52, 3 }
 0x21c   : > { %v1945_v35 = vsel %vm1928_vm5, %v1944_v5, %v1943_v31  ;;  %v1959_v40 = vsel %vm1928_vm5, %v1958_v22, %v1957_v33  ;;  %v5540_v5 = vld [vmem:[%s282_s5] sm:$0xff]  ;;  %v2149_v22 = vsub.s32 1, %v5477_v12  ;;  %s3777_s5 = scalar_lea.sflag [#allocation4], %s5060_s7 }
 0x21d   : > { %v1910_v53 = vpop.permute.xlu1 %1909 }
 0x21e   : > { %v1972_v24 = vrot.slane %v1910_v53, 3  ;;  %v5506_v53 = vsub.s32 %v2018_v36, %v5477_v12  ;;  %v2150_v25 = vrot.slane %v5540_v5, %v2149_v22 }
 0x220   : > { %v1973_v7 = vsel %vm1928_vm5, %v1972_v24, %v1971_v34  ;;  %v2164_v24 = vrot.slane %v5540_v5, %v2163_v21 }
 0x221   : > { %v1896_v60 = vpop.permute.xlu1 %1895  ;;  %v1880_v61 = vpop.permute.xlu0 %1879 }
 0x222   : > { %v1960_v26 = vrot.slane %v1896_v60, 2  ;;  %v1946_v27 = vrot.slane %v1880_v61, 2 }
 0x224   : > { %v1961_v42 = vsel %vm1931_vm11, %v1960_v26, %v1959_v40  ;;  %v1947_v43 = vsel %vm1931_vm11, %v1946_v27, %v1945_v35 }
 0x225   : > { %v1882_v18 = vpop.permute.xlu1 %1881  ;;  %v1912_v6 = vpop.permute.xlu0 %1911 }
 0x226   : > { %v1974_v28 = vrot.slane %v1912_v6, 2  ;;  %v1948_v32 = vrot.slane %v1882_v18, 1  ;;  %v2143_v18 = vrot.slane %v5540_v5, %v2142_v4  ;;  %v2156_v6 = vsub.s32 2, %v5477_v12 }
 0x228   : > { %v1975_v44 = vsel %vm1931_vm11, %v1974_v28, %v1973_v7  ;;  %v1949_v46 = vsel %vm1934_vm14, %v1948_v32, %v1947_v43  ;;  %v2157_v19 = vrot.slane %v5540_v5, %v2156_v6 }
 0x229   : > { %v1914_v38 = vpop.permute.xlu1 %1913  ;;  %v1898_v39 = vpop.permute.xlu0 %1897 }
 0x22a   : > { %v1976_v20 = vrot.slane %v1914_v38, 1  ;;  %v1962_v41 = vrot.slane %v1898_v39, 1 }
 0x22c   : > { %v1977_v47 = vsel %vm1934_vm14, %v1976_v20, %v1975_v44  ;;  %v1963_v48 = vsel %vm1934_vm14, %v1962_v41, %v1961_v42 }
 0x22d   : > { %v1998_v49 = vcombine.low %v1949_v46, %v1977_v47  ;;  %v1999_v50 = vcombine.high %v1949_v46, %v1977_v47  ;;  %v1982_v51 = vcombine.low %v5471_v37, %v1963_v48  ;;  %v1983_v52 = vcombine.high %v5471_v37, %v1963_v48 }
 0x22f   : > { %v2006_v54 = vrot.slane %v1998_v49, %v5498_v45  ;;  %v2013_v55 = vrot.slane %v1999_v50, %v5498_v45  ;;  %v1990_v56 = vrot.slane %v1982_v51, %v5498_v45  ;;  %v1997_v57 = vrot.slane %v1983_v52, %v5498_v45 }
 0x231   : > { %v2014_v58 = vcombine.low %v1990_v56, %v2006_v54  ;;  %v2015_v59 = vcombine.high %v1990_v56, %v2006_v54  ;;  %v2030_v61 = vcombine.low %v1997_v57, %v2013_v55  ;;  %v2031_v11 = vcombine.high %v1997_v57, %v2013_v55 }
 0x232   : > { %v2177_v57 = vsub.s32 5, %v5477_v12 }
 0x233   : > { %v2022_v60 = vrot.slane %v2014_v58, %v5506_v53  ;;  %v2029_v63 = vrot.slane %v2015_v59, %v5506_v53  ;;  %v2038_v10 = vrot.slane %v2030_v61, %v5506_v53  ;;  %v2045_v16 = vrot.slane %v2031_v11, %v5506_v53 }
 0x234   : > { %v2170_v58 = vsub.s32 4, %v5477_v12  ;;  %v2178_v59 = vrot.slane %v5540_v5, %v2177_v57 }
 0x235   : > { %v2051_v37 = vsel %vm2050_vm15, %v2022_v60, -inf  ;;  %v2046_v62 = vcombine.high %v2022_v60, %v4878_v0  ;;  %v2057_v13 = vsel %vm2050_vm15, %v2029_v63, -inf  ;;  %v2047_v14 = vcombine.high %v2029_v63, %v4878_v0 }
 0x236   : > { %2052 = vmax.xlane.f32.xlu0 %v2051_v37  ;;  %v2063_v15 = vsel %vm2050_vm15, %v2038_v10, -inf  ;;  %v5525_v8 = vcombine.high %v2038_v10, %v4878_v0  ;;  %v2069_v23 = vsel %vm2050_vm15, %v2045_v16, -inf  ;;  %v5532_v2 = vcombine.high %v2045_v16, %v4878_v0 }
 0x237   : > { %v2054_v9 = vsel %vm2050_vm15, %v2046_v62, -inf  ;;  %v2060_v17 = vsel %vm2050_vm15, %v2047_v14, -inf  ;;  %v2171_v61 = vrot.slane %v5540_v5, %v2170_v58 }
 0x238   : > { %2055 = vmax.xlane.f32.xlu1 %v2054_v9  ;;  %v2066_v1 = vsel %vm2050_vm15, %v5525_v8, -inf  ;;  %v2072_v3 = vsel %vm2050_vm15, %v5532_v2, -inf }
 0x23a   : > { %2058 = vmax.xlane.f32.xlu0 %v2057_v13 }
 0x23c   : > { %2064 = vmax.xlane.f32.xlu1 %v2063_v15 }
 0x23e   : > { %2061 = vmax.xlane.f32.xlu0 %v2060_v17 }
 0x240   : > { %2070 = vmax.xlane.f32.xlu1 %v2069_v23 }
 0x242   : > { %2067 = vmax.xlane.f32.xlu0 %v2066_v1 }
 0x246   : > { %2073 = vmax.xlane.f32.xlu0 %v2072_v3 }
 0x251   : > { %2145 = vbcast.lane.b32.xlu1 %v2143_v18, 256 }
 0x255   : > { %2159 = vbcast.lane.b32.xlu1 %v2157_v19, 256 }
 0x259   : > { %2166 = vbcast.lane.b32.xlu1 %v2164_v24, 256 }
 0x25c   : > { %2152 = vbcast.lane.b32.xlu0 %v2150_v25, 256 }
 0x2bf   : > { %v2053_v26 = vpop.xlane.xlu0 %2052 }
 0x2c0   : > { %v2075_v27 = vsub.f32 %v2022_v60, %v2053_v26  ;;  %v2191_v60 = vsub.s32 7, %v5477_v12 }
 0x2c1   : > { %v2056_v28 = vpop.xlane.xlu1 %2055 }
 0x2c2   : > { %v2083_v29 = vmul.f32 1.442695, %v2075_v27  ;;  %v2076_v30 = vsub.f32 %v2046_v62, %v2056_v28  ;;  %v2192_v37 = vrot.slane %v5540_v5, %v2191_v60 }
 0x2c3   : > { %v2059_v31 = vpop.xlane.xlu0 %2058 }
 0x2c4   : > { %4642 = vpow2.f32 %v2083_v29  ;;  %v2085_v32 = vmul.f32 1.442695, %v2076_v30  ;;  %v2077_v33 = vsub.f32 %v2029_v63, %v2059_v31 }
 0x2c5   : > { %v2065_v34 = vpop.xlane.xlu1 %2064 }
 0x2c6   : > { %4644 = vpow2.f32 %v2085_v32  ;;  %v2087_v35 = vmul.f32 1.442695, %v2077_v33  ;;  %v2079_v36 = vsub.f32 %v2038_v10, %v2065_v34 }
 0x2c7   : > { %v2062_v38 = vpop.xlane.xlu0 %2061 }
 0x2c8   : > { %4646 = vpow2.f32 %v2087_v35  ;;  %v2091_v39 = vmul.f32 1.442695, %v2079_v36  ;;  %v2078_v40 = vsub.f32 %v2047_v14, %v2062_v38 }
 0x2c9   : > { %v2071_v7 = vpop.xlane.xlu1 %2070 }
 0x2ca   : > { %4648 = vpow2.f32 %v2091_v39  ;;  %v2089_v20 = vmul.f32 1.442695, %v2078_v40  ;;  %v2081_v41 = vsub.f32 %v2045_v16, %v2071_v7 }
 0x2cb   : > { %v2068_v62 = vpop.xlane.xlu0 %2067 }
 0x2cc   : > { %4650 = vpow2.f32 %v2089_v20  ;;  %v2095_v42 = vmul.f32 1.442695, %v2081_v41  ;;  %v2080_v63 = vsub.f32 %v5525_v8, %v2068_v62  ;;  %v2184_v8 = vsub.s32 6, %v5477_v12 }
 0x2cd   : > { %v2146_v1 = vpop.permute.xlu1 %2145 }
 0x2ce   : > { %4652 = vpow2.f32 %v2095_v42  ;;  %v2093_v10 = vmul.f32 1.442695, %v2080_v63  ;;  %v2185_v23 = vrot.slane %v5540_v5, %v2184_v8 }
 0x2cf   : > { %v2074_v9 = vpop.xlane.xlu0 %2073 }
 0x2d0   : > { %v2082_v11 = vsub.f32 %v5532_v2, %v2074_v9  ;;  %4654 = vpow2.f32 %v2093_v10 }
 0x2d1   : > { %v5549_v43 = vpop.eup %4642  ;;  %v2160_v2 = vpop.permute.xlu1 %2159 }
 0x2d2   : > { %v2099_v44 = vsel %vm2050_vm15, %v5549_v43, 0.0  ;;  %v2097_v13 = vmul.f32 1.442695, %v2082_v11 }
 0x2d3   : > { %v5553_v46 = vpop.eup %4644  ;;  %2100 = vadd.xlane.f32.xlu1 %v2099_v44  ;;  %v2153_v4 = vpop.permute.xlu0 %2152 }
 0x2d4   : > { %v2102_v47 = vsel %vm2050_vm15, %v5553_v46, 0.0  ;;  %4656 = vpow2.f32 %v2097_v13 }
 0x2d5   : > { %v5557_v48 = vpop.eup %4646  ;;  %2103 = vadd.xlane.f32.xlu0 %v2102_v47  ;;  %v2167_v3 = vpop.permute.xlu1 %2166 }
 0x2d6   : > { %v2105_v49 = vsel %vm2050_vm15, %v5557_v48, 0.0 }
 0x2d7   : > { %v5561_v50 = vpop.eup %4648  ;;  %2106 = vadd.xlane.f32.xlu1 %v2105_v49 }
 0x2d8   : > { %v2111_v54 = vsel %vm2050_vm15, %v5561_v50, 0.0 }
 0x2d9   : > { %v5563_v51 = vpop.eup %4650 }
 0x2da   : > { %v2108_v52 = vsel %vm2050_vm15, %v5563_v51, 0.0 }
 0x2db   : > { %v5569_v55 = vpop.eup %4652  ;;  %2109 = vadd.xlane.f32.xlu0 %v2108_v52  ;;  %2112 = vadd.xlane.f32.xlu1 %v2111_v54 }
 0x2dc   : > { %v2117_v56 = vsel %vm2050_vm15, %v5569_v55, 0.0 }
 0x2dd   : > { %v5581_v14 = vpop.eup %4654 }
 0x2de   : > { %v2114_v15 = vsel %vm2050_vm15, %v5581_v14, 0.0 }
 0x2df   : > { %2118 = vadd.xlane.f32.xlu1 %v2117_v56 }
 0x2e1   : > { %v5585_v16 = vpop.eup %4656 }
 0x2e2   : > { %v2120_v17 = vsel %vm2050_vm15, %v5585_v16, 0.0 }
 0x2f0   : > { %2180 = vbcast.lane.b32.xlu1 %v2178_v59, 256 }
 0x2f1   : > { %2173 = vbcast.lane.b32.xlu0 %v2171_v61, 256 }
 0x2f4   : > { %2194 = vbcast.lane.b32.xlu1 %v2192_v37, 256 }
 0x310   : > { %2115 = vadd.xlane.f32.xlu0 %v2114_v15 }
 0x314   : > { %2121 = vadd.xlane.f32.xlu0 %v2120_v17 }
 0x32a   : > { %2187 = vbcast.lane.b32.xlu0 %v2185_v23, 256 }
 0x35c   : > { %v2101_v18 = vpop.xlane.xlu1 %2100 }
 0x35d   : > { %4658 = vrcp.f32 %v2101_v18 }
 0x35e   : > { %v2104_v6 = vpop.xlane.xlu0 %2103 }
 0x35f   : > { %4660 = vrcp.f32 %v2104_v6 }
 0x360   : > { %v2107_v19 = vpop.xlane.xlu1 %2106 }
 0x361   : > { %4662 = vrcp.f32 %v2107_v19 }
 0x364   : > { %v2110_v21 = vpop.xlane.xlu0 %2109  ;;  %v2113_v22 = vpop.xlane.xlu1 %2112 }
 0x365   : > { %4664 = vrcp.f32 %v2110_v21 }
 0x366   : > { %4666 = vrcp.f32 %v2113_v22 }
 0x368   : > { %v2174_v41 = vpop.permute.xlu0 %2173  ;;  %v2119_v10 = vpop.xlane.xlu1 %2118 }
 0x369   : > { %4668 = vrcp.f32 %v2119_v10 }
 0x36a   : > { %v4659_v12 = vpop.eup %4658 }
 0x36b   : > { %v2124_v5 = vmul.f32 %v4659_v12, %v5549_v43 }
 0x36c   : > { %v4661_v24 = vpop.eup %4660 }
 0x36d   : > { %v2196_v25 = vmul.f32 %v2146_v1, %v2124_v5  ;;  %v2126_v26 = vmul.f32 %v4661_v24, %v5553_v46 }
 0x36e   : > { %v4663_v27 = vpop.eup %4662 }
 0x36f   : > { %v2218_v28 = vrot.slane %v2196_v25, %v5498_v45  ;;  %2204 = vst.msk [vmem:[%s5596_s14] sm:$0xf] %vm2050_vm15, %v2196_v25  ;;  %v2197_v29 = vmul.f32 %v2153_v4, %v2126_v26  ;;  %v2128_v30 = vmul.f32 %v4663_v27, %v5557_v48  ;;  %v2181_v4 = vpop.permute.xlu1 %2180 }
 0x371   : > { %v5604_v31 = vrot.slane %v2218_v28, %v5506_v53  ;;  %2205 = vst.msk [vmem:[%s5596_s14 + $0x4] sm:$0xf] %vm2050_vm15, %v2197_v29  ;;  %v2242_v32 = vrot.slane %v2197_v29, %v5498_v45  ;;  %v2198_v33 = vmul.f32 %v2160_v2, %v2128_v30  ;;  %v2219_v39 = vcombine.high %v2218_v28, %v4878_v0 }
 0x372   : > { %v4665_v34 = vpop.eup %4664 }
 0x373   : > { %v4667_v35 = vpop.eup %4666  ;;  %v2234_v36 = vcombine.high %v5604_v31, %v4878_v0  ;;  %v5612_v38 = vrot.slane %v2242_v32, %v5506_v53  ;;  %2206 = vst.msk [vmem:[%s5596_s14 + $0x8] sm:$0xf] %vm2050_vm15, %v2198_v33  ;;  %v2266_v7 = vrot.slane %v2198_v33, %v5498_v45  ;;  %v2130_v20 = vmul.f32 %v4665_v34, %v5563_v51  ;;  %v2195_v5 = vpop.permute.xlu1 %2194 }
 0x374   : > { %v2132_v40 = vmul.f32 %v4667_v35, %v5561_v50  ;;  %v2243_v43 = vcombine.high %v2242_v32, %v4878_v0  ;;  %v2233_v47 = vrot.slane %v2219_v39, %v5506_v53 }
 0x375   : > { %2412 = vrot.lane.b32.xlu0 %v2234_v36, %s4885_s29  ;;  %v2258_v42 = vcombine.high %v5612_v38, %v4878_v0  ;;  %v2199_v46 = vmul.f32 %v2167_v3, %v2130_v20  ;;  %v5627_v48 = vrot.slane %v2266_v7, %v5506_v53  ;;  %v2267_v56 = vcombine.high %v2266_v7, %v4878_v0 }
 0x376   : > { %v2200_v44 = vmul.f32 %v2174_v41, %v2132_v40  ;;  %v2257_v50 = vrot.slane %v2243_v43, %v5506_v53  ;;  %v2235_v63 = vcombine.high %v2233_v47, %v4878_v0  ;;  %v4669_v17 = vpop.eup %4668 }
 0x377   : > { %2414 = vrot.lane.b32.xlu1 %v2258_v42, %s4885_s29  ;;  %v2290_v49 = vrot.slane %v2199_v46, %v5498_v45  ;;  %2207 = vst.msk [vmem:[%s5596_s14 + $0xc] sm:$0xf] %vm2050_vm15, %v2199_v46  ;;  %v2282_v54 = vcombine.high %v5627_v48, %v4878_v0  ;;  %v2281_v60 = vrot.slane %v2267_v56, %v5506_v53  ;;  %v4692_v56 = vld [vmem:[%s5072_s20 + $0x88] sm:$0xff] }
 0x378   : > { %2208 = vst.msk [vmem:[%s5596_s14 + $0x10] sm:$0xf] %vm2050_vm15, %v2200_v44  ;;  %v2314_v52 = vrot.slane %v2200_v44, %v5498_v45  ;;  %v2136_v23 = vmul.f32 %v4669_v17, %v5569_v55  ;;  %v2259_v30 = vcombine.high %v2257_v50, %v4878_v0  ;;  %v4699_v17 = vld [vmem:[%s5072_s20 + $0x190] sm:$0xff] }
 0x379   : > { %2444 = vrot.lane.b32.xlu0 %v2233_v47, %s4886_s11  ;;  %v5637_v51 = vrot.slane %v2290_v49, %v5506_v53  ;;  %v2291_v58 = vcombine.high %v2290_v49, %v4878_v0  ;;  %v2283_v11 = vcombine.high %v2281_v60, %v4878_v0 }
 0x37a   : > { %v5649_v59 = vrot.slane %v2314_v52, %v5506_v53  ;;  %v2315_v62 = vcombine.high %v2314_v52, %v4878_v0  ;;  %v4691_v52 = vld [vmem:[%s5072_s20 + $0x90] sm:$0xff] }
 0x37b   : > { %2446 = vrot.lane.b32.xlu1 %v2257_v50, %s4886_s11  ;;  %v2306_v57 = vcombine.high %v5637_v51, %v4878_v0  ;;  %v2305_v61 = vrot.slane %v2291_v58, %v5506_v53  ;;  %v4690_v50 = vld [vmem:[%s5072_s20 + $0x98] sm:$0xff] }
 0x37c   : > { %v2330_v37 = vcombine.high %v5649_v59, %v4878_v0  ;;  %v2329_v9 = vrot.slane %v2315_v62, %v5506_v53 }
 0x37d   : > { %2416 = vrot.lane.b32.xlu0 %v2282_v54, %s4885_s29  ;;  %v2307_v35 = vcombine.high %v2305_v61, %v4878_v0 }
 0x37e   : > { %v2331_v13 = vcombine.high %v2329_v9, %v4878_v0 }
 0x37f   : > { %2418 = vrot.lane.b32.xlu1 %v2306_v57, %s4885_s29 }
 0x381   : > { %2448 = vrot.lane.b32.xlu0 %v2281_v60, %s4886_s11  ;;  %v4693_v60 = vld [vmem:[%s5072_s20 + $0x80] sm:$0xff] }
 0x383   : > { %2450 = vrot.lane.b32.xlu1 %v2305_v61, %s4886_s11 }
 0x385   : > { %2420 = vrot.lane.b32.xlu0 %v2330_v37, %s4885_s29  ;;  %v4695_v37 = vld [vmem:[%s5072_s20 + $0x110] sm:$0xff] }
 0x389   : > { %2476 = vrot.lane.b32.xlu0 %v2235_v63, %s4887_s26 }
 0x38d   : > { %2452 = vrot.lane.b32.xlu0 %v2329_v9, %s4886_s11  ;;  %v4696_v9 = vld [vmem:[%s5072_s20 + $0x108] sm:$0xff] }
 0x391   : > { %2480 = vrot.lane.b32.xlu0 %v2283_v11, %s4887_s26 }
 0x395   : > { %2484 = vrot.lane.b32.xlu0 %v2331_v13, %s4887_s26  ;;  %v4697_v13 = vld [vmem:[%s5072_s20 + $0x100] sm:$0xff] }
 0x399   : > { %v2116_v15 = vpop.xlane.xlu0 %2115 }
 0x39a   : > { %4670 = vrcp.f32 %v2116_v15 }
 0x39d   : > { %v2122_v8 = vpop.xlane.xlu0 %2121 }
 0x39e   : > { %4672 = vrcp.f32 %v2122_v8  ;;  %v4700_v8 = vld [vmem:[%s5072_s20 + $0x188] sm:$0xff] }
 0x3a1   : > { %v2188_v1 = vpop.permute.xlu0 %2187 }
 0x3a2   : > { %v2202_v2 = vmul.f32 %v2188_v1, %v2136_v23  ;;  %v4701_v1 = vld [vmem:[%s5072_s20 + $0x180] sm:$0xff] }
 0x3a4   : > { %2210 = vst.msk [vmem:[%s5596_s14 + $0x18] sm:$0xf] %vm2050_vm15, %v2202_v2  ;;  %v2362_v3 = vrot.slane %v2202_v2, %v5498_v45 }
 0x3a6   : > { %v5673_v18 = vrot.slane %v2362_v3, %v5506_v53  ;;  %v2363_v19 = vcombine.high %v2362_v3, %v4878_v0 }
 0x3a7   : > { %v4671_v6 = vpop.eup %4670 }
 0x3a8   : > { %v2134_v21 = vmul.f32 %v4671_v6, %v5581_v14  ;;  %v2378_v22 = vcombine.high %v5673_v18, %v4878_v0  ;;  %v2377_v26 = vrot.slane %v2363_v19, %v5506_v53 }
 0x3aa   : > { %v2201_v55 = vmul.f32 %v2181_v4, %v2134_v21  ;;  %2424 = vrot.lane.b32.xlu0 %v2378_v22, %s4885_s29  ;;  %v2379_v28 = vcombine.high %v2377_v26, %v4878_v0 }
 0x3ab   : > { %v4673_v12 = vpop.eup %4672 }
 0x3ac   : > { %2209 = vst.msk [vmem:[%s5596_s14 + $0x14] sm:$0xf] %vm2050_vm15, %v2201_v55  ;;  %v2338_v24 = vrot.slane %v2201_v55, %v5498_v45  ;;  %v2138_v25 = vmul.f32 %v4673_v12, %v5585_v16 }
 0x3ae   : > { %v5686_v27 = vrot.slane %v2338_v24, %v5506_v53  ;;  %v2203_v14 = vmul.f32 %v2195_v5, %v2138_v25  ;;  %2456 = vrot.lane.b32.xlu0 %v2377_v26, %s4886_s11  ;;  %v2339_v16 = vcombine.high %v2338_v24, %v4878_v0  ;;  %v4702_v24 = vld [vmem:[%s5072_s20 + $0x38] sm:$0xff]  ;;  %v4703_v26 = vld [vmem:[%s5072_s20 + $0x30] sm:$0xff] }
 0x3b0   : > { %2211 = vst.msk [vmem:[%s5596_s14 + $0x1c] sm:$0xf] %vm2050_vm15, %v2203_v14  ;;  %v2354_v29 = vcombine.high %v5686_v27, %v4878_v0  ;;  %v2386_v32 = vrot.slane %v2203_v14, %v5498_v45  ;;  %v2353_v33 = vrot.slane %v2339_v16, %v5506_v53  ;;  %v4706_v16 = vld [vmem:[%s5072_s20 + $0xd0] sm:$0xff] }
 0x3b2   : > { %2488 = vrot.lane.b32.xlu0 %v2379_v28, %s4887_s26  ;;  %2422 = vrot.lane.b32.xlu1 %v2354_v29, %s4885_s29  ;;  %v5703_v34 = vrot.slane %v2386_v32, %v5506_v53  ;;  %v2387_v39 = vcombine.high %v2386_v32, %v4878_v0  ;;  %v2355_v45 = vcombine.high %v2353_v33, %v4878_v0  ;;  %v4705_v28 = vld [vmem:[%s5072_s20 + $0x28] sm:$0xff] }
 0x3b4   : > { %v2402_v36 = vcombine.high %v5703_v34, %v4878_v0  ;;  %v2401_v40 = vrot.slane %v2387_v39, %v5506_v53 }
 0x3b6   : > { %2478 = vrot.lane.b32.xlu1 %v2259_v30, %s4887_s26  ;;  %v2403_v7 = vcombine.high %v2401_v40, %v4878_v0  ;;  %v4707_v30 = vld [vmem:[%s5072_s20 + $0x20] sm:$0xff] }
 0x3ba   : > { %2454 = vrot.lane.b32.xlu1 %v2353_v33, %s4886_s11  ;;  %v4708_v33 = vld [vmem:[%s5072_s20 + $0xc8] sm:$0xff] }
 0x3be   : > { %2482 = vrot.lane.b32.xlu1 %v2307_v35, %s4887_s26 }
 0x3c2   : > { %2426 = vrot.lane.b32.xlu1 %v2402_v36, %s4885_s29  ;;  %v4709_v36 = vld [vmem:[%s5072_s20 + $0xb8] sm:$0xff] }
 0x3c6   : > { %2486 = vrot.lane.b32.xlu1 %v2355_v45, %s4887_s26  ;;  %v4710_v45 = vld [vmem:[%s5072_s20 + $0xc0] sm:$0xff] }
 0x3ca   : > { %2458 = vrot.lane.b32.xlu1 %v2401_v40, %s4886_s11  ;;  %v4711_v40 = vld [vmem:[%s5072_s20 + $0xb0] sm:$0xff] }
 0x3ce   : > { %2490 = vrot.lane.b32.xlu1 %v2403_v7, %s4887_s26  ;;  %v4712_v7 = vld [vmem:[%s5072_s20 + $0xa8] sm:$0xff] }
 0x3e7   : > { %v2413_v20 = vpop.permute.xlu0 %2412 }
 0x3e8   : > { %v2501_v53 = vsel %vm2500_vm2, %v5604_v31, %v2413_v20 }
 0x3e9   : > { %v2415_v15 = vpop.permute.xlu1 %2414 }
 0x3ea   : > { %v2502_v5 = vsel %vm2500_vm2, %v5612_v38, %v2415_v15  ;;  %v4704_v38 = vld [vmem:[%s5072_s20 + $0xd8] sm:$0xff]  ;;  %v4731_v15 = vld [vmem:[%s5072_s20 + $0x70] sm:$0xff] }
 0x3eb   : > { %v2445_v41 = vpop.permute.xlu0 %2444 }
 0x3ec   : > { %v2510_v46 = vsel %vm2509_vm4, %v2501_v53, %v2445_v41  ;;  %v4713_v41 = vld [vmem:[%s5072_s20 + $0x158] sm:$0xff] }
 0x3ed   : > { %v2447_v23 = vpop.permute.xlu1 %2446 }
 0x3ef   : > { %v2417_v42 = vpop.permute.xlu0 %2416 }
 0x3f0   : > { %v2503_v54 = vsel %vm2500_vm2, %v5627_v48, %v2417_v42  ;;  %v4694_v48 = vld [vmem:[%s5072_s20 + $0x118] sm:$0xff]  ;;  %v4714_v42 = vld [vmem:[%s5072_s20 + $0xa0] sm:$0xff] }
 0x3f1   : > { %v2419_v2 = vpop.permute.xlu1 %2418 }
 0x3f2   : > { %v2504_v32 = vsel %vm2500_vm2, %v5637_v51, %v2419_v2  ;;  %v4737_v2 = vld [vmem:[%s5072_s20 + $0xe0] sm:$0xff] }
 0x3f3   : > { %v2449_v43 = vpop.permute.xlu0 %2448 }
 0x3f4   : > { %v2512_v57 = vsel %vm2509_vm4, %v2503_v54, %v2449_v43  ;;  %v4715_v43 = vld [vmem:[%s5072_s20 + $0x150] sm:$0xff]  ;;  %v4720_v54 = vld [vmem:[%s5072_s20 + $0x128] sm:$0xff] }
 0x3f5   : > { %v2451_v4 = vpop.permute.xlu1 %2450 }
 0x3f6   : > { %v2513_v35 = vsel %vm2509_vm4, %v2504_v32, %v2451_v4  ;;  %v4739_v4 = vld [vmem:[%s5072_s20 + $0x170] sm:$0xff] }
 0x3f7   : > { %v2421_v44 = vpop.permute.xlu0 %2420 }
 0x3f8   : > { %v2505_v63 = vsel %vm2500_vm2, %v5649_v59, %v2421_v44  ;;  %v4698_v59 = vld [vmem:[%s5072_s20 + $0x198] sm:$0xff] }
 0x3fb   : > { %v2477_v47 = vpop.permute.xlu0 %2476 }
 0x3fc   : > { %v5721_v49 = vsel %vm2518_vm6, %v2510_v46, %v2477_v47  ;;  %v4716_v46 = vld [vmem:[%s5072_s20 + $0x148] sm:$0xff] }
 0x3fd   : > { %4394 = vmatmul.mubr.msk.f32.vlgmr.msra.gmra.mxu0 %vm2527_vm8, %v5721_v49 }
 0x3fe   : > { %4408 = vmatpush3.msra.mxu0 %v4690_v50  ;;  %4415 = vmatprep.mubr.msk.f32.mxu0 %vm4879_vm0, %v4878_v0  ;;  %v4718_v50 = vld [vmem:[%s5072_s20 + $0x140] sm:$0xff] }
 0x3ff   : > { %4409 = vmatprep.subr.mxu0 %v4878_v0  ;;  %v2453_v31 = vpop.permute.xlu0 %2452 }
 0x400   : > { %4410 = vmatpush3.msra.mxu0 %v4691_v52  ;;  %v2514_v10 = vsel %vm2509_vm4, %v2505_v63, %v2453_v31  ;;  %v4726_v63 = vld [vmem:[%s5072_s20 + $0x1c0] sm:$0xff] }
 0x401   : > { %4411 = vmatprep.subr.mxu0 %v4878_v0 }
 0x402   : > { %4412 = vmatpush3.msra.mxu0 %v4692_v56  ;;  %v4721_v56 = vld [vmem:[%s5072_s20 + $0x1d8] sm:$0xff] }
 0x403   : > { %4413 = vmatprep.subr.mxu0 %v4878_v0  ;;  %v2481_v58 = vpop.permute.xlu0 %2480 }
 0x404   : > { %4414 = vmatpush3.msra.mxu0 %v4693_v60  ;;  %v5738_v61 = vsel %vm2518_vm6, %v2512_v57, %v2481_v58  ;;  %v4722_v57 = vld [vmem:[%s5072_s20 + $0x120] sm:$0xff]  ;;  %v4723_v58 = vld [vmem:[%s5072_s20 + $0x1d0] sm:$0xff] }
 0x405   : > { %4429 = vmatprep.subr.mxu0 %v4878_v0  ;;  %4416 = vmatmul.mubr.msk.f32.vlgmr.msra.gmra.mxu0 %vm2527_vm8, %v5738_v61 }
 0x406   : > { %4430 = vmatpush3.msra.mxu0 %v4694_v48  ;;  %4437 = vmatprep.mubr.msk.f32.mxu0 %vm4879_vm0, %v4878_v0  ;;  %v4724_v48 = vld [vmem:[%s5072_s20 + $0x1c8] sm:$0xff] }
 0x407   : > { %4431 = vmatprep.subr.mxu0 %v4878_v0  ;;  %v2485_v62 = vpop.permute.xlu0 %2484 }
 0x408   : > { %4432 = vmatpush3.msra.mxu0 %v4695_v37  ;;  %v5755_v11 = vsel %vm2518_vm6, %v2514_v10, %v2485_v62  ;;  %v4725_v62 = vld [vmem:[%s5072_s20 + $0x1b8] sm:$0xff]  ;;  %v4728_v10 = vld [vmem:[%s5072_s20 + $0x1a8] sm:$0xff] }
 0x409   : > { %4433 = vmatprep.subr.mxu0 %v4878_v0 }
 0x40a   : > { %4434 = vmatpush3.msra.mxu0 %v4696_v9  ;;  %v4727_v9 = vld [vmem:[%s5072_s20 + $0x1b0] sm:$0xff] }
 0x40b   : > { %4435 = vmatprep.subr.mxu0 %v4878_v0 }
 0x40c   : > { %4436 = vmatpush3.msra.mxu0 %v4697_v13  ;;  %v4730_v13 = vld [vmem:[%s5072_s20 + $0x1a0] sm:$0xff] }
 0x40d   : > { %4438 = vmatmul.mubr.msk.f32.vlgmr.msra.gmra.mxu0 %vm2527_vm8, %v5755_v11  ;;  %4451 = vmatprep.subr.mxu0 %v4878_v0 }
 0x40e   : > { %4452 = vmatpush3.msra.mxu0 %v4698_v59  ;;  %4459 = vmatprep.mubr.msk.f32.mxu0 %vm4879_vm0, %v4878_v0  ;;  %v4732_v59 = vld [vmem:[%s5072_s20 + $0x68] sm:$0xff] }
 0x40f   : > { %4453 = vmatprep.subr.mxu0 %v4878_v0 }
 0x410   : > { %4454 = vmatpush3.msra.mxu0 %v4699_v17  ;;  %v4733_v17 = vld [vmem:[%s5072_s20 + $0x60] sm:$0xff] }
 0x411   : > { %4455 = vmatprep.subr.mxu0 %v4878_v0 }
 0x412   : > { %4456 = vmatpush3.msra.mxu0 %v4700_v8  ;;  %v4734_v8 = vld [vmem:[%s5072_s20 + $0xf8] sm:$0xff] }
 0x413   : > { %4457 = vmatprep.subr.mxu0 %v4878_v0 }
 0x414   : > { %4458 = vmatpush3.msra.mxu0 %v4701_v1  ;;  %v4736_v1 = vld [vmem:[%s5072_s20 + $0xe8] sm:$0xff] }
 0x415   : > { %4473 = vmatprep.subr.mxu0 %v4878_v0 }
 0x41c   : > { %v2425_v3 = vpop.permute.xlu0 %2424 }
 0x41d   : > { %v2507_v19 = vsel %vm2500_vm2, %v5673_v18, %v2425_v3  ;;  %v2511_v18 = vsel %vm2509_vm4, %v2502_v5, %v2447_v23  ;;  %v4735_v23 = vld [vmem:[%s5072_s20 + $0xf0] sm:$0xff]  ;;  %v4738_v3 = vld [vmem:[%s5072_s20 + $0x178] sm:$0xff] }
 0x420   : > { %v2457_v6 = vpop.permute.xlu0 %2456 }
 0x421   : > { %v2516_v21 = vsel %vm2509_vm4, %v2507_v19, %v2457_v6  ;;  %v4740_v6 = vld [vmem:[%s5072_s20 + $0x168] sm:$0xff]  ;;  %v4741_v19 = vld [vmem:[%s5072_s20 + $0x160] sm:$0xff] }
 0x424   : > { %v2489_v22 = vpop.permute.xlu0 %2488  ;;  %v5774_v55 = vpop.permute.xlu1 %2422 }
 0x425   : > { %v5777_v12 = vsel %vm2518_vm6, %v2516_v21, %v2489_v22  ;;  %v2506_v53 = vsel %vm2500_vm2, %v5686_v27, %v5774_v55  ;;  %v4719_v27 = vld [vmem:[%s5072_s20 + $0x130] sm:$0xff]  ;;  %v4742_v21 = vld [vmem:[%s5072_s20 + $0x1f8] sm:$0xff]  ;;  %v4744_v55 = vld [vmem:[%s5072_s20 + $0x1e8] sm:$0xff] }
 0x426   : > { %4460 = vmatmul.mubr.msk.f32.vlgmr.msra.gmra.mxu0 %vm2527_vm8, %v5777_v12  ;;  %v4743_v22 = vld [vmem:[%s5072_s20 + $0x1f0] sm:$0xff] }
 0x427   : > { %4474 = vmatpush3.msra.mxu0 %v4702_v24  ;;  %4481 = vmatprep.mubr.msk.f32.mxu0 %vm4879_vm0, %v4878_v0 }
 0x428   : > { %4475 = vmatprep.subr.mxu0 %v4878_v0  ;;  %v2479_v25 = vpop.permute.xlu1 %2478 }
 0x429   : > { %4476 = vmatpush3.msra.mxu0 %v4703_v26  ;;  %v5790_v14 = vsel %vm2518_vm6, %v2511_v18, %v2479_v25 }
 0x42a   : > { %4477 = vmatprep.subr.mxu0 %v4878_v0  ;;  %4405 = vmatmul.mubr.msk.f32.vlgmr.msra.gmra.mxu1 %vm2527_vm8, %v5790_v14 }
 0x42b   : > { %4419 = vmatpush3.msra.mxu1 %v4704_v38  ;;  %4478 = vmatpush3.msra.mxu0 %v4705_v28 }
 0x42c   : > { %4420 = vmatprep.subr.mxu1 %v4878_v0  ;;  %4479 = vmatprep.subr.mxu0 %v4878_v0  ;;  %v2455_v29 = vpop.permute.xlu1 %2454 }
 0x42d   : > { %4421 = vmatpush3.msra.mxu1 %v4706_v16  ;;  %4480 = vmatpush3.msra.mxu0 %v4707_v30  ;;  %v2515_v47 = vsel %vm2509_vm4, %v2506_v53, %v2455_v29 }
 0x42e   : > { %4422 = vmatprep.subr.mxu1 %v4878_v0  ;;  %4482 = vmatmul.mubr.msk.f32.vlgmr.msra.gmra.mxu0 %vm2527_vm8, %v5721_v49  ;;  %v4717_v49 = vld [vmem:[%s5072_s20 + $0x138] sm:$0xff] }
 0x42f   : > { %4495 = vmatprep.subr.mxu0 %v4878_v0  ;;  %4423 = vmatpush3.msra.mxu1 %v4708_v33 }
 0x430   : > { %4496 = vmatpush3.msra.mxu0 %v4709_v36  ;;  %4424 = vmatprep.subr.mxu1 %v4878_v0  ;;  %v2483_v39 = vpop.permute.xlu1 %2482 }
 0x431   : > { %4497 = vmatprep.subr.mxu0 %v4878_v0  ;;  %4425 = vmatpush3.msra.mxu1 %v4710_v45  ;;  %v5814_v51 = vsel %vm2518_vm6, %v2513_v35, %v2483_v39 }
 0x432   : > { %4498 = vmatpush3.msra.mxu0 %v4711_v40  ;;  %4426 = vmatprep.mubr.msk.f32.mxu1 %vm4879_vm0, %v4878_v0 }
 0x433   : > { %4440 = vmatprep.subr.mxu1 %v4878_v0  ;;  %4499 = vmatprep.subr.mxu0 %v4878_v0 }
 0x434   : > { %4427 = vmatmul.mubr.msk.f32.vlgmr.msra.gmra.mxu1 %vm2527_vm8, %v5814_v51  ;;  %4500 = vmatpush3.msra.mxu0 %v4712_v7  ;;  %v2427_v20 = vpop.permute.xlu1 %2426 }
 0x435   : > { %4441 = vmatpush3.msra.mxu1 %v4713_v41  ;;  %4501 = vmatprep.subr.mxu0 %v4878_v0 }
 0x436   : > { %4442 = vmatprep.subr.mxu1 %v4878_v0  ;;  %4502 = vmatpush3.msra.mxu0 %v4714_v42 }
 0x437   : > { %4443 = vmatpush3.msra.mxu1 %v4715_v43  ;;  %4503 = vmatprep.mubr.msk.f32.mxu0 %vm4879_vm0, %v4878_v0 }
 0x438   : > { %4444 = vmatprep.subr.mxu1 %v4878_v0  ;;  %4504 = vmatmul.mubr.msk.f32.vlgmr.msra.gmra.mxu0 %vm2527_vm8, %v5738_v61  ;;  %v2487_v44 = vpop.permute.xlu1 %2486  ;;  %v2508_v61 = vsel %vm2500_vm2, %v5703_v34, %v2427_v20 }
 0x439   : > { %4517 = vmatprep.subr.mxu0 %v4878_v0  ;;  %4445 = vmatpush3.msra.mxu1 %v4716_v46  ;;  %v5845_v31 = vsel %vm2518_vm6, %v2515_v47, %v2487_v44 }
 0x43a   : > { %4518 = vmatpush3.msra.mxu0 %v4717_v49  ;;  %4446 = vmatprep.subr.mxu1 %v4878_v0 }
 0x43b   : > { %4519 = vmatprep.subr.mxu0 %v4878_v0  ;;  %4447 = vmatpush3.msra.mxu1 %v4718_v50 }
 0x43c   : > { %4520 = vmatpush3.msra.mxu0 %v4719_v27  ;;  %4448 = vmatprep.mubr.msk.f32.mxu1 %vm4879_vm0, %v4878_v0  ;;  %v2459_v52 = vpop.permute.xlu1 %2458 }
 0x43d   : > { %4462 = vmatprep.subr.mxu1 %v4878_v0  ;;  %4521 = vmatprep.subr.mxu0 %v4878_v0  ;;  %v2517_v37 = vsel %vm2509_vm4, %v2508_v61, %v2459_v52 }
 0x43e   : > { %4449 = vmatmul.mubr.msk.f32.vlgmr.msra.gmra.mxu1 %vm2527_vm8, %v5845_v31  ;;  %4522 = vmatpush3.msra.mxu0 %v4720_v54 }
 0x43f   : > { %4463 = vmatpush3.msra.mxu1 %v4721_v56  ;;  %4523 = vmatprep.subr.mxu0 %v4878_v0 }
 0x440   : > { %4464 = vmatprep.subr.mxu1 %v4878_v0  ;;  %4524 = vmatpush3.msra.mxu0 %v4722_v57  ;;  %v2491_v60 = vpop.permute.xlu1 %2490 }
 0x441   : > { %4465 = vmatpush3.msra.mxu1 %v4723_v58  ;;  %4525 = vmatprep.mubr.msk.f32.mxu0 %vm4879_vm0, %v4878_v0  ;;  %v5875_v34 = vsel %vm2518_vm6, %v2517_v37, %v2491_v60 }
 0x442   : > { %4466 = vmatprep.subr.mxu1 %v4878_v0  ;;  %4526 = vmatmul.mubr.msk.f32.vlgmr.msra.gmra.mxu0 %vm2527_vm8, %v5755_v11  ;;  %v4729_v11 = vld [vmem:[%s5072_s20 + $0x78] sm:$0xff] }
 0x443   : > { %4539 = vmatprep.subr.mxu0 %v4878_v0  ;;  %4467 = vmatpush3.msra.mxu1 %v4724_v48 }
 0x444   : > { %4540 = vmatpush3.msra.mxu0 %v4725_v62  ;;  %4468 = vmatprep.subr.mxu1 %v4878_v0 }
 0x445   : > { %4541 = vmatprep.subr.mxu0 %v4878_v0  ;;  %4469 = vmatpush3.msra.mxu1 %v4726_v63 }
 0x446   : > { %4542 = vmatpush3.msra.mxu0 %v4727_v9  ;;  %4470 = vmatprep.mubr.msk.f32.mxu1 %vm4879_vm0, %v4878_v0 }
 0x447   : > { %4484 = vmatprep.subr.mxu1 %v4878_v0  ;;  %4543 = vmatprep.subr.mxu0 %v4878_v0 }
 0x448   : > { %4471 = vmatmul.mubr.msk.f32.vlgmr.msra.gmra.mxu1 %vm2527_vm8, %v5875_v34  ;;  %4544 = vmatpush3.msra.mxu0 %v4728_v10 }
 0x449   : > { %4485 = vmatpush3.msra.mxu1 %v4729_v11  ;;  %4545 = vmatprep.subr.mxu0 %v4878_v0 }
 0x44a   : > { %4486 = vmatprep.subr.mxu1 %v4878_v0  ;;  %4546 = vmatpush3.msra.mxu0 %v4730_v13 }
 0x44b   : > { %4487 = vmatpush3.msra.mxu1 %v4731_v15  ;;  %4547 = vmatprep.mubr.msk.f32.mxu0 %vm4879_vm0, %v4878_v0 }
 0x44c   : > { %4488 = vmatprep.subr.mxu1 %v4878_v0  ;;  %4548 = vmatmul.mubr.msk.f32.vlgmr.msra.gmra.mxu0 %vm2527_vm8, %v5777_v12  ;;  %v4745_v12 = vld [vmem:[%s5072_s20 + $0x1e0] sm:$0xff]  ;;  %s3942_s20 = sshll.u32 %s5060_s7, 3 }
 0x44d   : > { %4489 = vmatpush3.msra.mxu1 %v4732_v59  ;;  %4492 = vmatprep.mubr.msk.f32.mxu1 %vm4879_vm0, %v4878_v0  ;;  %s270_s6 = scalar_lea.vmem [#allocation7], %s3942_s20 }
 0x44e   : > { %4490 = vmatprep.subr.mxu1 %v4878_v0  ;;  %s3795_s8 = sshll.u32 %s270_s6, 4  ;;  %s3796_s8 = int_to_ptr.vmem [resolvable:$true] %s3795_s8 }
 0x44f   : > { %4491 = vmatpush3.msra.mxu1 %v4733_v17  ;;  %s4802_s10 = scalar_lea.vmem %s3796_s8, 128  ;;  %p4809_p2 = scmp.lt.s32.totalorder %s3796_s8, %s4807_s12 }
 0x450   : > { %4493 = vmatmul.mubr.msk.f32.vlgmr.msra.gmra.mxu1 %vm2527_vm8, %v5790_v14  ;;  %4506 = vmatprep.subr.mxu1 %v4878_v0  ;;  %p4803_p9 = scmp.ne.s32.totalorder %s3796_s8, %s4802_s10  ;;  %p4810_p4 = scmp.lt.s32.totalorder %s4808_s9, %s4802_s10 }
 0x451   : > { %4507 = vmatpush3.msra.mxu1 %v4734_v8  ;;  %4514 = vmatprep.mubr.msk.f32.mxu1 %vm4879_vm0, %v4878_v0 }
 0x452   : > { %4508 = vmatprep.subr.mxu1 %v4878_v0  ;;  %p4804_p10 = pnand %p4803_p9, %p6018_p7  ;;  %p4811_p3 = por %p4810_p4, %p4809_p2 }
 0x453   : > { %4509 = vmatpush3.msra.mxu1 %v4735_v23 }
 0x454   : > { %4510 = vmatprep.subr.mxu1 %v4878_v0  ;;  %p4805_p0 = pneg %p4804_p10 }
 0x455   : > { %4511 = vmatpush3.msra.mxu1 %v4736_v1 }
 0x456   : > { %4512 = vmatprep.subr.mxu1 %v4878_v0  ;;  %p4812_p5 = pnand %p4811_p3, %p4805_p0 }
 0x457   : > { %4513 = vmatpush3.msra.mxu1 %v4737_v2 }
 0x458   : > { %4515 = vmatmul.mubr.msk.f32.vlgmr.msra.gmra.mxu1 %vm2527_vm8, %v5814_v51  ;;  %4528 = vmatprep.subr.mxu1 %v4878_v0 }
 0x459   : > { %4529 = vmatpush3.msra.mxu1 %v4738_v3  ;;  %4536 = vmatprep.mubr.msk.f32.mxu1 %vm4879_vm0, %v4878_v0 }
 0x45a   : > { %4530 = vmatprep.subr.mxu1 %v4878_v0 }
 0x45b   : > { %4531 = vmatpush3.msra.mxu1 %v4739_v4 }
 0x45c   : > { %4532 = vmatprep.subr.mxu1 %v4878_v0 }
 0x45d   : > { %4533 = vmatpush3.msra.mxu1 %v4740_v6 }
 0x45e   : > { %4534 = vmatprep.subr.mxu1 %v4878_v0 }
 0x45f   : > { %4535 = vmatpush3.msra.mxu1 %v4741_v19 }
 0x460   : > { %4537 = vmatmul.mubr.msk.f32.vlgmr.msra.gmra.mxu1 %vm2527_vm8, %v5845_v31  ;;  %4550 = vmatprep.subr.mxu1 %v4878_v0 }
 0x461   : > { %4551 = vmatpush3.msra.mxu1 %v4742_v21  ;;  %4558 = vmatprep.mubr.msk.f32.mxu1 %vm4879_vm0, %v4878_v0 }
 0x462   : > { %4552 = vmatprep.subr.mxu1 %v4878_v0 }
 0x463   : > { %4553 = vmatpush3.msra.mxu1 %v4743_v22 }
 0x464   : > { %4554 = vmatprep.subr.mxu1 %v4878_v0 }
 0x465   : > { %4555 = vmatpush3.msra.mxu1 %v4744_v55 }
 0x466   : > { %4556 = vmatprep.subr.mxu1 %v4878_v0 }
 0x467   : > { %4557 = vmatpush3.msra.mxu1 %v4745_v12 }
 0x468   : > { %4559 = vmatmul.mubr.msk.f32.vlgmr.msra.gmra.mxu1 %vm2527_vm8, %v5875_v34 }
 0x4bd   : > { %v2597_v5 = vpop.f32.mrf.mxu0 }
 0x4be   : > { %v3672_v43 = vmul.f32 %v2597_v5, %v2597_v5 }
 0x4bf   : > { %v4395_v24 = vpop.f32.mrf.mxu0 }
 0x4c5   : > { %v2743_v18 = vpop.f32.mrf.mxu0 }
 0x4c6   : > { %v3674_v20 = vmul.f32 %v2743_v18, %v2743_v18 }
 0x4c7   : > { %v4417_v25 = vpop.f32.mrf.mxu0 }
 0x4cd   : > { %v2889_v26 = vpop.f32.mrf.mxu0 }
 0x4ce   : > { %v3676_v31 = vmul.f32 %v2889_v26, %v2889_v26 }
 0x4cf   : > { %v4439_v14 = vpop.f32.mrf.mxu0 }
 0x4e6   : > { %v3035_v38 = vpop.f32.mrf.mxu0 }
 0x4e7   : > { %v3678_v61 = vmul.f32 %v3035_v38, %v3035_v38 }
 0x4e8   : > { %v4461_v28 = vpop.f32.mrf.mxu0 }
 0x4ea   : > { %v2670_v29 = vpop.f32.mrf.mxu1 }
 0x4eb   : > { %v3673_v52 = vmul.f32 %v2670_v29, %v2670_v29 }
 0x4ec   : > { %v4406_v16 = vpop.f32.mrf.mxu1 }
 0x4ee   : > { %v3178_v30 = vpop.f32.mrf.mxu0 }
 0x4ef   : > { %v3680_v41 = vmul.f32 %v3178_v30, %v3178_v30 }
 0x4f0   : > { %v4483_v32 = vpop.f32.mrf.mxu0 }
 0x4f1   : > { %v3688_v46 = vadd.f32 %v3680_v41, %v3672_v43 }
 0x4f3   : > { %vm3698_vm9 = vcmp.eq.f32.partialorder %v3688_v46, inf  ;;  %v3701_v5 = vand.u32 2147483648, %v3688_v46  ;;  %vm3700_vm4 = vcmp.eq.f32.partialorder %v3688_v46, 0.0 }
 0x4f4   : > { %v2816_v33 = vpop.f32.mrf.mxu1 }
 0x4f5   : > { %v3675_v37 = vmul.f32 %v2816_v33, %v2816_v33 }
 0x4f6   : > { %v4428_v35 = vpop.f32.mrf.mxu1 }
 0x4f8   : > { %v3318_v0 = vpop.f32.mrf.mxu0 }
 0x4f9   : > { %v3682_v7 = vmul.f32 %v3318_v0, %v3318_v0 }
 0x4fa   : > { %v4505_v36 = vpop.f32.mrf.mxu0 }
 0x4fb   : > { %v3690_v44 = vadd.f32 %v3682_v7, %v3674_v20 }
 0x4fd   : > { %4674 = vrsqrt.f32 %v3690_v44  ;;  %vm3712_vm0 = vcmp.eq.f32.partialorder %v3690_v44, inf  ;;  %v3715_v4 = vand.u32 2147483648, %v3690_v44  ;;  %vm3714_vm10 = vcmp.eq.f32.partialorder %v3690_v44, 0.0 }
 0x4fe   : > { %v2962_v39 = vpop.f32.mrf.mxu1  ;;  %4676 = vrsqrt.f32 %v3688_v46 }
 0x4ff   : > { %v3677_v17 = vmul.f32 %v2962_v39, %v2962_v39 }
 0x500   : > { %v4450_v45 = vpop.f32.mrf.mxu1 }
 0x502   : > { %v3458_v51 = vpop.f32.mrf.mxu0 }
 0x503   : > { %v3684_v49 = vmul.f32 %v3458_v51, %v3458_v51 }
 0x504   : > { %v4527_v40 = vpop.f32.mrf.mxu0 }
 0x505   : > { %v5938_v56 = vadd.f32 %v3684_v49, %v3676_v31 }
 0x507   : > { %vm3726_vm6 = vcmp.eq.f32.partialorder %v5938_v56, inf  ;;  %v3729_v36 = vand.u32 2147483648, %v5938_v56  ;;  %vm3728_vm8 = vcmp.eq.f32.partialorder %v5938_v56, 0.0 }
 0x508   : > { %v3108_v42 = vpop.f32.mrf.mxu1 }
 0x509   : > { %v3679_v28 = vmul.f32 %v3108_v42, %v3108_v42 }
 0x50a   : > { %v4472_v53 = vpop.f32.mrf.mxu1  ;;  %v4675_v9 = vpop.eup %4674 }
 0x50b   : > { %v4677_v11 = vpop.eup %4676  ;;  %v3711_v13 = vmul.f32 %v4675_v9, %v3690_v44 }
 0x50c   : > { %v3598_v47 = vpop.f32.mrf.mxu0  ;;  %v3697_v15 = vmul.f32 %v4677_v11, %v3688_v46 }
 0x50d   : > { %v3686_v60 = vmul.f32 %v3598_v47, %v3598_v47  ;;  %v3713_v1 = vsel %vm3712_vm0, %v3690_v44, %v3711_v13 }
 0x50e   : > { %v4549_v50 = vpop.f32.mrf.mxu0  ;;  %v3699_v21 = vsel %vm3698_vm9, %v3688_v46, %v3697_v15  ;;  %v3716_v55 = vsel %vm3714_vm10, %v3715_v4, %v3713_v1 }
 0x50f   : > { %v5941_v63 = vadd.f32 %v3686_v60, %v3678_v61  ;;  %v3702_v26 = vsel %vm3700_vm4, %v3701_v5, %v3699_v21  ;;  %v3762_v14 = vrot.slane %v3716_v55, 6 }
 0x510   : > { %v3248_v27 = vpop.f32.mrf.mxu1 }
 0x511   : > { %v3681_v54 = vmul.f32 %v3248_v27, %v3248_v27  ;;  %v3743_v49 = vand.u32 2147483648, %v5941_v63  ;;  %vm3742_vm10 = vcmp.eq.f32.partialorder %v5941_v63, 0.0 }
 0x512   : > { %v4494_v57 = vpop.f32.mrf.mxu1 }
 0x513   : > { %v3689_v58 = vadd.f32 %v3681_v54, %v3673_v52 }
 0x515   : > { %4678 = vrsqrt.f32 %v3689_v58  ;;  %vm3705_vm15 = vcmp.eq.f32.partialorder %v3689_v58, inf  ;;  %v3708_v22 = vand.u32 2147483648, %v3689_v58  ;;  %vm3707_vm2 = vcmp.eq.f32.partialorder %v3689_v58, 0.0 }
 0x516   : > { %4680 = vrsqrt.f32 %v5938_v56 }
 0x518   : > { %v3388_v48 = vpop.f32.mrf.mxu1 }
 0x519   : > { %v3683_v62 = vmul.f32 %v3388_v48, %v3388_v48 }
 0x51a   : > { %v4516_v34 = vpop.f32.mrf.mxu1 }
 0x51b   : > { %v3691_v10 = vadd.f32 %v3683_v62, %v3675_v37 }
 0x51d   : > { %4682 = vrsqrt.f32 %v3691_v10  ;;  %vm3719_vm0 = vcmp.eq.f32.partialorder %v3691_v10, inf  ;;  %v3722_v51 = vand.u32 2147483648, %v3691_v10  ;;  %vm3721_vm9 = vcmp.eq.f32.partialorder %v3691_v10, 0.0 }
 0x51e   : > { %4684 = vrsqrt.f32 %v5941_v63 }
 0x520   : > { %v3528_v59 = vpop.f32.mrf.mxu1 }
 0x521   : > { %v3685_v8 = vmul.f32 %v3528_v59, %v3528_v59 }
 0x522   : > { %v4679_v23 = vpop.eup %4678  ;;  %v4538_v2 = vpop.f32.mrf.mxu1 }
 0x523   : > { %v4681_v3 = vpop.eup %4680  ;;  %v3704_v6 = vmul.f32 %v4679_v23, %v3689_v58  ;;  %v3693_v19 = vadd.f32 %v3685_v8, %v3677_v17 }
 0x524   : > { %v3725_v24 = vmul.f32 %v4681_v3, %v5938_v56 }
 0x525   : > { %v3706_v12 = vsel %vm3705_vm15, %v3689_v58, %v3704_v6  ;;  %4686 = vrsqrt.f32 %v3693_v19  ;;  %v3736_v31 = vand.u32 2147483648, %v3693_v19  ;;  %vm3735_vm15 = vcmp.eq.f32.partialorder %v3693_v19, 0.0 }
 0x526   : > { %v3709_v18 = vsel %vm3707_vm2, %v3708_v22, %v3706_v12  ;;  %v3727_v32 = vsel %vm3726_vm6, %v5938_v56, %v3725_v24 }
 0x527   : > { %v3760_v25 = vrot.slane %v3709_v18, 7  ;;  %v3730_v7 = vsel %vm3728_vm8, %v3729_v36, %v3727_v32 }
 0x528   : > { %v3668_v38 = vpop.f32.mrf.mxu1  ;;  %v3766_v43 = vrot.slane %v3730_v7, 4 }
 0x529   : > { %v3687_v29 = vmul.f32 %v3668_v38, %v3668_v38  ;;  %v3761_v16 = vsel %vm1916_vm3, %v3760_v25, %v3702_v26  ;;  %vm3740_vm3 = vcmp.eq.f32.partialorder %v5941_v63, inf }
 0x52a   : > { %v4683_v30 = vpop.eup %4682  ;;  %v4560_v33 = vpop.f32.mrf.mxu1  ;;  %v3763_v35 = vsel %vm1919_vm7, %v3762_v14, %v3761_v16  ;;  %vm3733_vm7 = vcmp.eq.f32.partialorder %v3693_v19, inf }
 0x52b   : > { %v4685_v0 = vpop.eup %4684  ;;  %v3718_v39 = vmul.f32 %v4683_v30, %v3691_v10  ;;  %v3695_v45 = vadd.f32 %v3687_v29, %v3679_v28 }
 0x52c   : > { %v3739_v20 = vmul.f32 %v4685_v0, %v5941_v63 }
 0x52d   : > { %v3720_v40 = vsel %vm3719_vm0, %v3691_v10, %v3718_v39  ;;  %4688 = vrsqrt.f32 %v3695_v45  ;;  %v3750_v37 = vand.u32 2147483648, %v3695_v45 }
 0x52e   : > { %v3723_v41 = vsel %vm3721_vm9, %v3722_v51, %v3720_v40  ;;  %v3741_v46 = vsel %vm3740_vm3, %v5941_v63, %v3739_v20 }
 0x52f   : > { %v3764_v42 = vrot.slane %v3723_v41, 5  ;;  %v3744_v52 = vsel %vm3742_vm10, %v3743_v49, %v3741_v46 }
 0x530   : > { %v3770_v57 = vrot.slane %v3744_v52, 2 }
 0x531   : > { %v3765_v44 = vsel %vm1922_vm12, %v3764_v42, %v3763_v35  ;;  %vm3747_vm12 = vcmp.eq.f32.partialorder %v3695_v45, inf }
 0x532   : > { %v4687_v53 = vpop.eup %4686  ;;  %v3767_v47 = vsel %vm1925_vm13, %v3766_v43, %v3765_v44  ;;  %vm3749_vm13 = vcmp.eq.f32.partialorder %v3695_v45, 0.0 }
 0x533   : > { %v3732_v50 = vmul.f32 %v4687_v53, %v3693_v19 }
 0x535   : > { %v3734_v27 = vsel %vm3733_vm7, %v3693_v19, %v3732_v50 }
 0x536   : > { %v3737_v54 = vsel %vm3735_vm15, %v3736_v31, %v3734_v27 }
 0x537   : > { %v3768_v56 = vrot.slane %v3737_v54, 3 }
 0x539   : > { %v3769_v58 = vsel %vm1928_vm5, %v3768_v56, %v3767_v47 }
 0x53a   : > { %v4689_v60 = vpop.eup %4688  ;;  %v3771_v61 = vsel %vm1931_vm11, %v3770_v57, %v3769_v58 }
 0x53b   : > { %v3746_v48 = vmul.f32 %v4689_v60, %v3695_v45 }
 0x53d   : > { %v3748_v62 = vsel %vm3747_vm12, %v3695_v45, %v3746_v48 }
 0x53e   : > { %v3751_v63 = vsel %vm3749_vm13, %v3750_v37, %v3748_v62 }
 0x53f   : > { %v3772_v34 = vrot.slane %v3751_v63, 1 }
 0x541   : > { %v3773_v9 = vsel %vm1934_vm14, %v3772_v34, %v3771_v61 }
 0x542   : > { %3775 = vst.msk [vmem:[%s270_s6] sm:$0xff] %vm362_vm1, %v3773_v9 }
 0x543   : > { %4815 = shalt.err (!%p4812_p5)
}
 0x544   : > { %s4816_s13 = scalar_lea.hbm %s5965_s30, 128  ;;  %s4820_s29 = scalar_lea.hbm %s6007_s3, 256 }
 0x545   : > { %p4817_p11 = scmp.ne.s32.totalorder %s5965_s30, %s4816_s13  ;;  %p4821_p6 = scmp.lt.s32.totalorder %s5965_s30, %s6007_s3 }
 0x546   : > { %p4822_p13 = scmp.lt.s32.totalorder %s4820_s29, %s4816_s13 }
 0x547   : > { %p4818_p12 = pnand %p4817_p11, %p6018_p7 }
 0x548   : > { %p4823_p1 = por %p4822_p13, %p4821_p6 }
 0x549   : > { %p4819_p8 = pneg %p4818_p12 }
 0x54b   : > { %p4824_p9 = pnand %p4823_p1, %p4819_p8 }
 0x54d   : > { %4827 = shalt.err (!%p4824_p9)
}
 0x54e   : > { %4565 = dma.vmem_to_hbm [thread:$0]  (%p6018_p7), %s3796_s8, 128, %s5965_s30, %s3777_s5  }
 0x54f PF: > { %s3811_s20 = sand.u32 1, %s4858_s15   ;;  %p6019_p10 = scmp.ne.s32.totalorder %s6014_s28, 0 }
 0x550   : > { %p6020_p0 = scmp.ge.s32.totalorder %s4870_s18, 2  ;;  %s3812_s25 = scalar_lea.sflag [#allocation4], %s3811_s20 }
 0x552   : > { %p4575_p2 = pnand %p6020_p0, %p6019_p10 }
 0x554   : > { %p4576_p4 = pneg %p4575_p2 }
 0x556   : > { %4853 = dma.done.wait (%p4576_p4), %s3812_s25, 128  }
 0x557   : > { %4855 = vsyncadd (%p4576_p4), %s3812_s25, 4294967168  ;;  %p21_p3 = scmp.ge.s32.totalorder %s4939_s21, 4   ;;  %s6021_s15 = smov %s4862_s16 }
 0x558   : > { %s6022_s16 = smov %s4866_s17  ;;  %s6023_s17 = smov %s4951_s24 }
 0x559   : > { %s6024_s18 = smov %s4939_s21  ;;  %23 = sbr.rel (!%p21_p3) target bundleno = 7 (0x7), region = 105 }
 0x55e   :  { %3825 = vsyncpa [#allocation3], 1 }
 0x55f   :  { %3827 = vsyncpa [#allocation3 + $0x1], 1 }
 0x560   :  { %3828 = vsyncpa [#allocation6], 1 }
 0x561   :  { %3830 = vsyncpa [#allocation6 + $0x1], 1 }
 0x562   :  { %3831 = vsyncpa [#allocation4], 1 }
 0x563   :  { %3833 = vsyncpa [#allocation4 + $0x1], 1 }

</bundles_post_ra>
